<compile_context>
chip_gen: v7x
topology: tpu7x:2x2x1
jax: 0.10.0
libtpu: 0.0.40
codegen_flags: <defaults>
</compile_context>

<pallas_src>
import math
import functools

import jax
import jax.numpy as jnp
from jax.experimental import pallas as pl
from jax.experimental.pallas import tpu as pltpu


_VMEM_FLOOR = 32 * 1024 * 1024   # lower bound on the per-call scoped VMEM budget
_VMEM_CEIL = 100 * 1024 * 1024   # never ask for more than this


def _round_up(x, m):
    return ((x + m - 1) // m) * m


def _pick_tile(dim, target, align):
    """Largest tile <= target that is a multiple of `align` and divides `dim`;
    otherwise the full dim (a full-extent block is always legal)."""
    if dim <= target:
        return dim
    t = (min(target, dim) // align) * align
    while t >= align:
        if dim % t == 0:
            return t
        t -= align
    return dim


def _clamp_vmem(nbytes):
    return int(min(max(nbytes, _VMEM_FLOOR), _VMEM_CEIL))


# ----------------------------------------------------------------------------
# Fused (LayerNorm) -> matmul -> (+bias) -> (GELU) -> (+residual) kernel
# ----------------------------------------------------------------------------

def _linear_kernel(*refs, activation, fuse_ln, has_bias, has_residual,
                   single_k, eps=1e-5):
    # refs: x, w, [bias], [ln_gamma, ln_beta], [residual], out,
    #       [acc (if K tiled)], [xln cache (if fuse_ln)]
    idx = 0
    x_ref = refs[idx]; idx += 1
    w_ref = refs[idx]; idx += 1
    b_ref = g_ref = bt_ref = res_ref = None
    if has_bias:
        b_ref = refs[idx]; idx += 1
    if fuse_ln:
        g_ref, bt_ref = refs[idx], refs[idx + 1]; idx += 2
    if has_residual:
        res_ref = refs[idx]; idx += 1
    o_ref = refs[idx]; idx += 1
    acc_ref = None
    if not single_k:
        acc_ref = refs[idx]; idx += 1
    xln_ref = None
    if fuse_ln:
        xln_ref = refs[idx]; idx += 1

    j = pl.program_id(1)
    k = pl.program_id(2)

    if fuse_ln:
        # LayerNorm statistics in f32; computed once per M-block (j == 0) and
        # cached in bf16 for the whole N-tile sweep.
        @pl.when(j == 0)
        def _compute_ln():
            xf = x_ref[...].astype(jnp.float32)
            mu = jnp.mean(xf, axis=-1, keepdims=True)
            var = jnp.mean(jnp.square(xf - mu), axis=-1, keepdims=True)
            xn = (xf - mu) * jax.lax.rsqrt(var + eps)
            xn = (xn * g_ref[...].astype(jnp.float32)
                  + bt_ref[...].astype(jnp.float32))
            xln_ref[...] = xn.astype(jnp.bfloat16)

        x_bf = xln_ref[...]
    else:
        x_bf = x_ref[...].astype(jnp.bfloat16)

    w_bf = w_ref[...].astype(jnp.bfloat16)

    def epilogue(y):
        if has_bias:
            y = y + b_ref[...].astype(jnp.float32)
        if activation == "gelu":
            y = jax.nn.gelu(y, approximate=True)  # minGPT NewGELU (tanh approx)
        if has_residual:
            y = y + res_ref[...].astype(jnp.float32)
        return y.astype(o_ref.dtype)

    if single_k:
        # Single reduction step: no accumulator scratch, write output directly.
        y = jnp.dot(x_bf, w_bf, preferred_element_type=jnp.float32)
        o_ref[...] = epilogue(y)
    else:
        @pl.when(k == 0)
        def _init():
            acc_ref[...] = jnp.zeros_like(acc_ref)

        acc_ref[...] += jnp.dot(x_bf, w_bf, preferred_element_type=jnp.float32)

        @pl.when(k == pl.num_programs(2) - 1)
        def _finalize():
            o_ref[...] = epilogue(acc_ref[...])


def pallas_linear(x2d, w, b=None, *, ln=None, residual=None, activation=None,
                  out_dtype=None, tm_target=None, tn_target=512, tk_target=512):
    """y = (+res)(act((LN?(x) @ w) + b)); x2d:(M,K) w:(K,N) -> (M,N)."""
    M, K = x2d.shape
    Kw, N = w.shape
    assert K == Kw
    out_dtype = out_dtype if out_dtype is not None else x2d.dtype
    fuse_ln = ln is not None

    if tm_target is None:
        # LN-fused linears keep K untiled; cap tm so the (tm, K) x block plus
        # the bf16 LN cache stay VMEM-friendly (v7x has only 64 MiB).
        tm_target = 256 if fuse_ln else 512

    # --- padding: M to a multiple of 16 (bf16 sublane packing); large,
    #     non-128-divisible N (e.g. vocab=50257) up to a multiple of 128 so tn
    #     never collapses to the full dimension (VMEM OOM hazard).
    Mp = _round_up(M, 16)
    Np = N if (N % 128 == 0 or N <= 512) else _round_up(N, 128)

    if Mp != M:
        x2d = jnp.pad(x2d, ((0, Mp - M), (0, 0)))
    if Np != N:
        w = jnp.pad(w, ((0, 0), (0, Np - N)))
        if b is not None:
            b = jnp.pad(b, (0, Np - N))
    if residual is not None and (Mp != M or Np != N):
        residual = jnp.pad(residual, ((0, Mp - M), (0, Np - N)))

    tm = _pick_tile(Mp, tm_target, 16)
    tn = _pick_tile(Np, tn_target, 128)
    # LayerNorm fusion needs the whole row of x per block -> keep K untiled then.
    # TODO(synk): two-pass LN would allow K tiling for extremely large K.
    tk = K if fuse_ln else _pick_tile(K, tk_target, 128)
    grid = (Mp // tm, Np // tn, K // tk)
    single_k = grid[2] == 1

    in_specs = [pl.BlockSpec((tm, tk), lambda i, j, k: (i, k)),   # x
                pl.BlockSpec((tk, tn), lambda i, j, k: (k, j))]   # w
    args = [x2d, w]
    if b is not None:
        in_specs.append(pl.BlockSpec((1, tn), lambda i, j, k: (0, j)))
        args.append(b.reshape(1, Np))
    if fuse_ln:
        gamma, beta = ln
        in_specs += [pl.BlockSpec((1, tk), lambda i, j, k: (0, k)),
                     pl.BlockSpec((1, tk), lambda i, j, k: (0, k))]
        args += [gamma.reshape(1, K), beta.reshape(1, K)]
    if residual is not None:
        in_specs.append(pl.BlockSpec((tm, tn), lambda i, j, k: (i, j)))
        args.append(residual)

    scratch = []
    if not single_k:
        scratch.append(pltpu.VMEM((tm, tn), jnp.float32))      # f32 accumulator
    if fuse_ln:
        scratch.append(pltpu.VMEM((tm, tk), jnp.bfloat16))     # LN'd x cache

    kernel = functools.partial(_linear_kernel, activation=activation,
                               fuse_ln=fuse_ln, has_bias=b is not None,
                               has_residual=residual is not None,
                               single_k=single_k)

    # --- per-call cost estimate and tile-derived VMEM budget
    out_its = jnp.dtype(out_dtype).itemsize
    bytes_accessed = int(x2d.size * x2d.dtype.itemsize
                         + w.size * w.dtype.itemsize
                         + Mp * Np * out_its
                         + (residual.size * residual.dtype.itemsize
                            if residual is not None else 0))
    cost = pl.CostEstimate(flops=2 * M * N * K,
                           transcendentals=(M * N if activation == "gelu" else 0),
                           bytes_accessed=bytes_accessed)

    per_step = (2 * tm * tk * x2d.dtype.itemsize        # double-buffered x
                + 2 * tk * tn * w.dtype.itemsize        # double-buffered w
                + 2 * tm * tn * out_its)                # double-buffered out
    if residual is not None:
        per_step += 2 * tm * tn * residual.dtype.itemsize
    if not single_k:
        per_step += 4 * tm * tn                         # f32 accumulator
    if fuse_ln:
        per_step += 2 * tm * tk + 8 * tm * tk           # bf16 cache + f32 LN temps
    per_step += 8 * tm * tn                             # f32 epilogue temporaries
    vmem_limit = _clamp_vmem(2 * per_step)

    # Keep the j axis un-shardable for LN-fused calls: the LN cache is filled
    # at j == 0 and reused across the whole j sweep of each i block.
    dim_sem = (("parallel", "arbitrary", "arbitrary") if fuse_ln
               else ("parallel", "parallel", "arbitrary"))

    out = pl.pallas_call(
        kernel,
        grid=grid,
        out_shape=jax.ShapeDtypeStruct((Mp, Np), out_dtype),
        in_specs=in_specs,
        out_specs=pl.BlockSpec((tm, tn), lambda i, j, k: (i, j)),
        scratch_shapes=scratch,
        compiler_params=pltpu.CompilerParams(
            dimension_semantics=dim_sem,
            vmem_limit_bytes=vmem_limit),
        cost_estimate=cost,
    )(*args)

    if Mp != M or Np != N:
        out = out[:M, :N]
    return out


# ----------------------------------------------------------------------------
# Head-major, query-tiled causal self-attention kernel
# ----------------------------------------------------------------------------

def _attention_kernel(q_ref, k_ref, v_ref, o_ref, *, n_head, hd, tq, scale):
    # q_ref: (n_head, tq, hd); k_ref, v_ref: (n_head, T, hd); o_ref: (tq, C)
    T = k_ref.shape[1]
    qi = pl.program_id(1)

    # Fold the 1/sqrt(hd) scale into q: one (nh, tq, hd) multiply instead of
    # scaling the (nh, tq, T) score matrix.
    q = (q_ref[...].astype(jnp.float32) * scale).astype(jnp.bfloat16)
    k = k_ref[...].astype(jnp.bfloat16)
    v = v_ref[...].astype(jnp.bfloat16)

    # Batched (over heads) scores: (n_head, tq, T), accumulated in f32.
    s = jax.lax.dot_general(q, k, (((2,), (2,)), ((0,), (0,))),
                            preferred_element_type=jnp.float32)

    # Causal mask for this query tile (built once per grid step).
    row = jax.lax.broadcasted_iota(jnp.int32, (tq, T), 0) + qi * tq
    col = jax.lax.broadcasted_iota(jnp.int32, (tq, T), 1)
    causal = (col <= row)[None, :, :]
    s = jnp.where(causal, s, jnp.float32(-1e30))   # diagonal always unmasked

    m = jnp.max(s, axis=-1, keepdims=True)
    p = jnp.exp(s - m)
    l = jnp.sum(p, axis=-1, keepdims=True)

    o = jax.lax.dot_general(p.astype(jnp.bfloat16), v,
                            (((2,), (1,)), ((0,), (0,))),
                            preferred_element_type=jnp.float32)
    o = o * pl.reciprocal(l, approx=True)          # EUP reciprocal, off VPU path

    # Merge heads -> lane-dense (tq, C) store (head h occupies cols h*hd:(h+1)*hd).
    # TODO(synk): add a KV grid axis with online-softmax for very long T.
    for h in range(n_head):
        o_ref[:, h * hd:(h + 1) * hd] = o[h].astype(o_ref.dtype)


def pallas_causal_attention(qkv, n_head):
    """qkv: (B, T, 3C) packed q|k|v -> (B, T, C) causal attention output."""
    B, T, threeC = qkv.shape
    C = threeC // 3
    hd = C // n_head
    scale = 1.0 / math.sqrt(hd)

    # Head-major layout plumbing on the wrapper side (full-lane kernel loads).
    qkv5 = qkv.reshape(B, T, 3, n_head, hd)
    q = jnp.transpose(qkv5[:, :, 0], (0, 2, 1, 3))   # (B, nh, T, hd)
    k = jnp.transpose(qkv5[:, :, 1], (0, 2, 1, 3))
    v = jnp.transpose(qkv5[:, :, 2], (0, 2, 1, 3))

    tq = _pick_tile(T, 256, 8)
    grid = (B, T // tq)

    kernel = functools.partial(_attention_kernel, n_head=n_head, hd=hd,
                               tq=tq, scale=scale)

    itemsize = qkv.dtype.itemsize
    cost = pl.CostEstimate(
        flops=4 * B * n_head * T * T * hd,
        transcendentals=B * n_head * T * T,
        bytes_accessed=int(qkv.size * itemsize + B * T * C * itemsize))

    per_step = (2 * (n_head * tq * hd + 2 * n_head * T * hd + tq * C) * itemsize
                + 3 * n_head * tq * T * 4        # f32 scores / exp temporaries
                + 2 * n_head * tq * hd * 4)      # f32 per-head output
    vmem_limit = _clamp_vmem(2 * per_step)

    return pl.pallas_call(
        kernel,
        grid=grid,
        out_shape=jax.ShapeDtypeStruct((B, T, C), qkv.dtype),
        in_specs=[pl.BlockSpec((None, n_head, tq, hd), lambda b, qi: (b, 0, qi, 0)),
                  pl.BlockSpec((None, n_head, T, hd), lambda b, qi: (b, 0, 0, 0)),
                  pl.BlockSpec((None, n_head, T, hd), lambda b, qi: (b, 0, 0, 0))],
        out_specs=pl.BlockSpec((None, tq, C), lambda b, qi: (b, qi, 0)),
        compiler_params=pltpu.CompilerParams(
            dimension_semantics=("parallel", "parallel"),
            vmem_limit_bytes=vmem_limit),
        cost_estimate=cost,
    )(q, k, v)


# ----------------------------------------------------------------------------
# GPT (encoder / decoder) forward, built from the Pallas kernels above
# ----------------------------------------------------------------------------

def gpt_forward(params, x, n_head):
    """x: (B, T, in_dim) continuous inputs -> logits (B, T, vocab_size)."""
    B, T, in_dim = x.shape
    C = params["pos"].shape[-1]
    cdt = jnp.bfloat16  # activation dtype between kernels

    # Input projection ("embedding" for continuous inputs).  The positional
    # embedding add is fused into the projection epilogue as a residual input.
    pos = jnp.tile(params["pos"][:T], (B, 1)).astype(cdt)          # (B*T, C)
    h2d = pallas_linear(x.reshape(B * T, in_dim), params["w_in"], params["b_in"],
                        residual=pos, out_dtype=cdt)
    # (dropout is identity in eval mode)

    for blk in params["blocks"]:
        # --- causal self-attention: LN1 fused into QKV, residual fused into proj
        qkv = pallas_linear(h2d, blk["w_qkv"], blk["b_qkv"],
                            ln=(blk["ln1_g"], blk["ln1_b"]), out_dtype=cdt)
        att = pallas_causal_attention(qkv.reshape(B, T, 3 * C), n_head)
        h2d = pallas_linear(att.reshape(B * T, C), blk["w_ap"], blk["b_ap"],
                            residual=h2d, out_dtype=cdt)

        # --- MLP: LN2 + GELU fused into FC, residual fused into out-proj
        ff = pallas_linear(h2d, blk["w_fc"], blk["b_fc"], activation="gelu",
                           ln=(blk["ln2_g"], blk["ln2_b"]), out_dtype=cdt)
        h2d = pallas_linear(ff, blk["w_mp"], blk["b_mp"],
                            residual=h2d, out_dtype=cdt)

    # final LN fused into the (bias-free) lm_head
    logits = pallas_linear(h2d, params["w_head"], None,
                           ln=(params["lnf_g"], params["lnf_b"]),
                           out_dtype=jnp.float32)
    return logits.reshape(B, T, -1), None


def encoder_decoder_gpt_forward(enc_params, dec_params, idx, n_head):
    outputs_enc, _ = gpt_forward(enc_params, idx, n_head)
    outputs_dec, _ = gpt_forward(dec_params, outputs_enc, n_head)
    return outputs_dec, outputs_enc


# ----------------------------------------------------------------------------
# Deterministic parameter init (weights in bf16 for MXU, norms/bias/pos in f32)
# ----------------------------------------------------------------------------

def init_gpt_params(key, in_dim, n_layer, n_embd, vocab_size, block_size):
    std = 0.02
    wdt = jnp.bfloat16
    ks = jax.random.split(key, 3 + n_layer)
    params = {
        "w_in": (jax.random.normal(ks[0], (in_dim, n_embd), jnp.float32) * std).astype(wdt),
        "b_in": jnp.zeros((n_embd,), jnp.float32),
        "pos": jax.random.normal(ks[1], (block_size, n_embd), jnp.float32) * std,
        "lnf_g": jnp.ones((n_embd,), jnp.float32),
        "lnf_b": jnp.zeros((n_embd,), jnp.float32),
        "w_head": (jax.random.normal(ks[2], (n_embd, vocab_size), jnp.float32) * std).astype(wdt),
        # lm_head has bias=False -> no b_head
        "blocks": [],
    }
    for li in range(n_layer):
        bk = jax.random.split(ks[3 + li], 4)
        params["blocks"].append({
            "ln1_g": jnp.ones((n_embd,), jnp.float32),
            "ln1_b": jnp.zeros((n_embd,), jnp.float32),
            "w_qkv": (jax.random.normal(bk[0], (n_embd, 3 * n_embd), jnp.float32) * std).astype(wdt),
            "b_qkv": jnp.zeros((3 * n_embd,), jnp.float32),
            "w_ap": (jax.random.normal(bk[1], (n_embd, n_embd), jnp.float32) * std).astype(wdt),
            "b_ap": jnp.zeros((n_embd,), jnp.float32),
            "ln2_g": jnp.ones((n_embd,), jnp.float32),
            "ln2_b": jnp.zeros((n_embd,), jnp.float32),
            "w_fc": (jax.random.normal(bk[2], (n_embd, 4 * n_embd), jnp.float32) * std).astype(wdt),
            "b_fc": jnp.zeros((4 * n_embd,), jnp.float32),
            "w_mp": (jax.random.normal(bk[3], (4 * n_embd, n_embd), jnp.float32) * std).astype(wdt),
            "b_mp": jnp.zeros((n_embd,), jnp.float32),
        })
    return params


# ----------------------------------------------------------------------------
# Main
# ----------------------------------------------------------------------------

if __name__ == "__main__":
    # small, module-consistent shapes
    n_layer, n_head, n_embd = 2, 4, 32
    vocab_size, block_size = 16, 8
    B, T = 2, 8

    root = jax.random.PRNGKey(0)
    k_enc, k_dec, k_x = jax.random.split(root, 3)

    # encoder consumes continuous (B, T, vocab_size); decoder consumes encoder logits
    enc_params = init_gpt_params(k_enc, vocab_size, n_layer, n_embd, vocab_size, block_size)
    dec_params = init_gpt_params(k_dec, vocab_size, n_layer, n_embd, vocab_size, block_size)

    idx = jax.random.normal(k_x, (B, T, vocab_size), jnp.float32)

    fwd = jax.jit(functools.partial(encoder_decoder_gpt_forward, n_head=n_head))
    outputs_dec, outputs_enc = fwd(enc_params, dec_params, idx)
    jax.block_until_ready((outputs_dec, outputs_enc))

    assert outputs_dec.shape == (B, T, vocab_size)
    assert outputs_enc.shape == (B, T, vocab_size)
    assert bool(jnp.all(jnp.isfinite(outputs_dec)))
    assert bool(jnp.all(jnp.isfinite(outputs_enc)))
    print("KERNEL_OK")
</pallas_src>

<mosaic_0001>
module attributes {stable_mosaic.version = 11 : i64} {
  func.func @_linear_kernel(%arg0: i32, %arg1: i32, %arg2: i32, %arg3: memref<16x16xf32, #tpu.memory_space<vmem>>, %arg4: memref<16x32xbf16, #tpu.memory_space<vmem>>, %arg5: memref<1x32xf32, #tpu.memory_space<vmem>>, %arg6: memref<16x32xbf16, #tpu.memory_space<vmem>>, %arg7: memref<16x32xbf16, #tpu.memory_space<vmem>>) attributes {dimension_semantics = [#tpu.dimension_semantics<parallel>, #tpu.dimension_semantics<parallel>, #tpu.dimension_semantics<arbitrary>], iteration_bounds = array<i64: 1, 1, 1>, scalar_prefetch = 0 : i64, scratch_operands = 0 : i64, tpu.core_type = #tpu.core_type<tc>, window_params = [{transform_indices = @transform_0, window_bounds = array<i64: 16, 16>}, {transform_indices = @transform_1, window_bounds = array<i64: 16, 32>}, {transform_indices = @transform_2, window_bounds = array<i64: 1, 32>}, {transform_indices = @transform_3, window_bounds = array<i64: 16, 32>}, {transform_indices = @transform_4, window_bounds = array<i64: 16, 32>}]} {
    %c0 = arith.constant 0 : index
    %c0_0 = arith.constant 0 : index
    %0 = vector.load %arg3[%c0, %c0_0] : memref<16x16xf32, #tpu.memory_space<vmem>>, vector<16x16xf32>
    %1 = arith.truncf %0 : vector<16x16xf32> to vector<16x16xbf16>
    %c0_1 = arith.constant 0 : index
    %c0_2 = arith.constant 0 : index
    %2 = vector.load %arg4[%c0_1, %c0_2] : memref<16x32xbf16, #tpu.memory_space<vmem>>, vector<16x32xbf16>
    %cst = arith.constant dense<0.000000e+00> : vector<16x32xf32>
    %3 = tpu.matmul %1, %2, %cst {dimension_numbers = #tpu.dot_dimension_numbers<[1], [0], [0], [1], [0, 0, 1, 1], [], []>} : vector<16x16xbf16>, vector<16x32xbf16>, vector<16x32xf32> -> vector<16x32xf32>
    %c0_3 = arith.constant 0 : index
    %c0_4 = arith.constant 0 : index
    %4 = vector.load %arg5[%c0_3, %c0_4] : memref<1x32xf32, #tpu.memory_space<vmem>>, vector<1x32xf32>
    %5 = vector.broadcast %4 : vector<1x32xf32> to vector<16x32xf32>
    %6 = arith.addf %3, %5 : vector<16x32xf32>
    %c0_5 = arith.constant 0 : index
    %c0_6 = arith.constant 0 : index
    %7 = vector.load %arg6[%c0_5, %c0_6] : memref<16x32xbf16, #tpu.memory_space<vmem>>, vector<16x32xbf16>
    %8 = arith.extf %7 : vector<16x32xbf16> to vector<16x32xf32>
    %9 = arith.addf %6, %8 : vector<16x32xf32>
    %10 = arith.truncf %9 : vector<16x32xf32> to vector<16x32xbf16>
    %c0_7 = arith.constant 0 : index
    %c0_8 = arith.constant 0 : index
    %11 = vector.load %arg7[%c0_7, %c0_8] : memref<16x32xbf16, #tpu.memory_space<vmem>>, vector<16x32xbf16>
    tpu.vector_store %arg7[%c0_7, %c0_8], %10 {strides = array<i32>} : memref<16x32xbf16, #tpu.memory_space<vmem>>, vector<16x32xbf16>,
    return
  }
  func.func @transform_0(%arg0: i32, %arg1: i32, %arg2: i32) -> (i32, i32) {
    %c0_i32 = arith.constant 0 : i32
    return %arg0, %arg2 : i32, i32
  }
  func.func @transform_1(%arg0: i32, %arg1: i32, %arg2: i32) -> (i32, i32) {
    %c0_i32 = arith.constant 0 : i32
    return %arg2, %arg1 : i32, i32
  }
  func.func @transform_2(%arg0: i32, %arg1: i32, %arg2: i32) -> (i32, i32) {
    %c0_i32 = arith.constant 0 : i32
    %c0_i32_0 = arith.constant 0 : i32
    return %c0_i32, %arg1 : i32, i32
  }
  func.func @transform_3(%arg0: i32, %arg1: i32, %arg2: i32) -> (i32, i32) {
    %c0_i32 = arith.constant 0 : i32
    return %arg0, %arg1 : i32, i32
  }
  func.func @transform_4(%arg0: i32, %arg1: i32, %arg2: i32) -> (i32, i32) {
    %c0_i32 = arith.constant 0 : i32
    return %arg0, %arg1 : i32, i32
  }
}

module attributes {stable_mosaic.version = 11 : i64} {
  func.func @_linear_kernel(%arg0: i32, %arg1: i32, %arg2: i32, %arg3: memref<16x32xbf16, #tpu.memory_space<vmem>>, %arg4: memref<32x96xbf16, #tpu.memory_space<vmem>>, %arg5: memref<1x96xf32, #tpu.memory_space<vmem>>, %arg6: memref<1x32xf32, #tpu.memory_space<vmem>>, %arg7: memref<1x32xf32, #tpu.memory_space<vmem>>, %arg8: memref<16x96xbf16, #tpu.memory_space<vmem>>, %arg9: memref<16x32xbf16, #tpu.memory_space<vmem>>) attributes {dimension_semantics = [#tpu.dimension_semantics<parallel>, #tpu.dimension_semantics<arbitrary>, #tpu.dimension_semantics<arbitrary>], iteration_bounds = array<i64: 1, 1, 1>, scalar_prefetch = 0 : i64, scratch_operands = 1 : i64, tpu.core_type = #tpu.core_type<tc>, window_params = [{transform_indices = @transform_0, window_bounds = array<i64: 16, 32>}, {transform_indices = @transform_1, window_bounds = array<i64: 32, 96>}, {transform_indices = @transform_2, window_bounds = array<i64: 1, 96>}, {transform_indices = @transform_3, window_bounds = array<i64: 1, 32>}, {transform_indices = @transform_4, window_bounds = array<i64: 1, 32>}, {transform_indices = @transform_5, window_bounds = array<i64: 16, 96>}]} {
    %c0_i32 = arith.constant 0 : i32
    %0 = arith.cmpi eq, %arg1, %c0_i32 : i32
    %1 = arith.extui %0 : i1 to i32
    %c0_i32_0 = arith.constant 0 : i32
    %2 = arith.cmpi ne, %1, %c0_i32_0 : i32
    scf.if %2 {
      %c0_8 = arith.constant 0 : index
      %c0_9 = arith.constant 0 : index
      %11 = vector.load %arg3[%c0_8, %c0_9] : memref<16x32xbf16, #tpu.memory_space<vmem>>, vector<16x32xbf16>
      %12 = arith.extf %11 : vector<16x32xbf16> to vector<16x32xf32>
      %cst_10 = arith.constant dense<0.000000e+00> : vector<16xf32>
      %13 = vector.multi_reduction <add>, %12, %cst_10 [1] : vector<16x32xf32> to vector<16xf32>
      %14 = vector.shape_cast %13 : vector<16xf32> to vector<16x1xf32>
      %cst_11 = arith.constant 3.200000e+01 : f32
      %15 = vector.broadcast %cst_11 : f32 to vector<16x1xf32>
      %16 = arith.divf %14, %15 : vector<16x1xf32>
      %17 = vector.broadcast %16 : vector<16x1xf32> to vector<16x32xf32>
      %18 = arith.subf %12, %17 : vector<16x32xf32>
      %19 = arith.mulf %18, %18 : vector<16x32xf32>
      %cst_12 = arith.constant dense<0.000000e+00> : vector<16xf32>
      %20 = vector.multi_reduction <add>, %19, %cst_12 [1] : vector<16x32xf32> to vector<16xf32>
      %21 = vector.shape_cast %20 : vector<16xf32> to vector<16x1xf32>
      %cst_13 = arith.constant 3.200000e+01 : f32
      %22 = vector.broadcast %cst_13 : f32 to vector<16x1xf32>
      %23 = arith.divf %21, %22 : vector<16x1xf32>
      %24 = vector.broadcast %16 : vector<16x1xf32> to vector<16x32xf32>
      %25 = arith.subf %12, %24 : vector<16x32xf32>
      %cst_14 = arith.constant 9.99999974E-6 : f32
      %26 = vector.broadcast %cst_14 : f32 to vector<16x1xf32>
      %27 = arith.addf %23, %26 : vector<16x1xf32>
      %28 = math.rsqrt %27 : vector<16x1xf32>
      %29 = vector.broadcast %28 : vector<16x1xf32> to vector<16x32xf32>
      %30 = arith.mulf %25, %29 : vector<16x32xf32>
      %c0_15 = arith.constant 0 : index
      %c0_16 = arith.constant 0 : index
      %31 = vector.load %arg6[%c0_15, %c0_16] : memref<1x32xf32, #tpu.memory_space<vmem>>, vector<1x32xf32>
      %32 = vector.broadcast %31 : vector<1x32xf32> to vector<16x32xf32>
      %33 = arith.mulf %30, %32 : vector<16x32xf32>
      %c0_17 = arith.constant 0 : index
      %c0_18 = arith.constant 0 : index
      %34 = vector.load %arg7[%c0_17, %c0_18] : memref<1x32xf32, #tpu.memory_space<vmem>>, vector<1x32xf32>
      %35 = vector.broadcast %34 : vector<1x32xf32> to vector<16x32xf32>
      %36 = arith.addf %33, %35 : vector<16x32xf32>
      %37 = arith.truncf %36 : vector<16x32xf32> to vector<16x32xbf16>
      %c0_19 = arith.constant 0 : index
      %c0_20 = arith.constant 0 : index
      %38 = vector.load %arg9[%c0_19, %c0_20] : memref<16x32xbf16, #tpu.memory_space<vmem>>, vector<16x32xbf16>
      tpu.vector_store %arg9[%c0_19, %c0_20], %37 {strides = array<i32>} : memref<16x32xbf16, #tpu.memory_space<vmem>>, vector<16x32xbf16>,
    } else {
    }
    %c0 = arith.constant 0 : index
    %c0_1 = arith.constant 0 : index
    %3 = vector.load %arg9[%c0, %c0_1] : memref<16x32xbf16, #tpu.memory_space<vmem>>, vector<16x32xbf16>
    %c0_2 = arith.constant 0 : index
    %c0_3 = arith.constant 0 : index
    %4 = vector.load %arg4[%c0_2, %c0_3] : memref<32x96xbf16, #tpu.memory_space<vmem>>, vector<32x96xbf16>
    %cst = arith.constant dense<0.000000e+00> : vector<16x96xf32>
    %5 = tpu.matmul %3, %4, %cst {dimension_numbers = #tpu.dot_dimension_numbers<[1], [0], [0], [1], [0, 0, 1, 1], [], []>} : vector<16x32xbf16>, vector<32x96xbf16>, vector<16x96xf32> -> vector<16x96xf32>
    %c0_4 = arith.constant 0 : index
    %c0_5 = arith.constant 0 : index
    %6 = vector.load %arg5[%c0_4, %c0_5] : memref<1x96xf32, #tpu.memory_space<vmem>>, vector<1x96xf32>
    %7 = vector.broadcast %6 : vector<1x96xf32> to vector<16x96xf32>
    %8 = arith.addf %5, %7 : vector<16x96xf32>
    %9 = arith.truncf %8 : vector<16x96xf32> to vector<16x96xbf16>
    %c0_6 = arith.constant 0 : index
    %c0_7 = arith.constant 0 : index
    %10 = vector.load %arg8[%c0_6, %c0_7] : memref<16x96xbf16, #tpu.memory_space<vmem>>, vector<16x96xbf16>
    tpu.vector_store %arg8[%c0_6, %c0_7], %9 {strides = array<i32>} : memref<16x96xbf16, #tpu.memory_space<vmem>>, vector<16x96xbf16>,
    return
  }
  func.func @transform_0(%arg0: i32, %arg1: i32, %arg2: i32) -> (i32, i32) {
    %c0_i32 = arith.constant 0 : i32
    return %arg0, %arg2 : i32, i32
  }
  func.func @transform_1(%arg0: i32, %arg1: i32, %arg2: i32) -> (i32, i32) {
    %c0_i32 = arith.constant 0 : i32
    return %arg2, %arg1 : i32, i32
  }
  func.func @transform_2(%arg0: i32, %arg1: i32, %arg2: i32) -> (i32, i32) {
    %c0_i32 = arith.constant 0 : i32
    %c0_i32_0 = arith.constant 0 : i32
    return %c0_i32, %arg1 : i32, i32
  }
  func.func @transform_3(%arg0: i32, %arg1: i32, %arg2: i32) -> (i32, i32) {
    %c0_i32 = arith.constant 0 : i32
    %c0_i32_0 = arith.constant 0 : i32
    return %c0_i32, %arg2 : i32, i32
  }
  func.func @transform_4(%arg0: i32, %arg1: i32, %arg2: i32) -> (i32, i32) {
    %c0_i32 = arith.constant 0 : i32
    %c0_i32_0 = arith.constant 0 : i32
    return %c0_i32, %arg2 : i32, i32
  }
  func.func @transform_5(%arg0: i32, %arg1: i32, %arg2: i32) -> (i32, i32) {
    %c0_i32 = arith.constant 0 : i32
    return %arg0, %arg1 : i32, i32
  }
}

module attributes {stable_mosaic.version = 11 : i64} {
  func.func @_attention_kernel(%arg0: i32, %arg1: i32, %arg2: memref<1x4x8x8xbf16, #tpu.memory_space<vmem>>, %arg3: memref<1x4x8x8xbf16, #tpu.memory_space<vmem>>, %arg4: memref<1x4x8x8xbf16, #tpu.memory_space<vmem>>, %arg5: memref<1x8x32xbf16, #tpu.memory_space<vmem>>) attributes {dimension_semantics = [#tpu.dimension_semantics<parallel>, #tpu.dimension_semantics<parallel>], iteration_bounds = array<i64: 2, 1>, scalar_prefetch = 0 : i64, scratch_operands = 0 : i64, tpu.core_type = #tpu.core_type<tc>, window_params = [{transform_indices = @transform_0, window_bounds = array<i64: 1, 4, 8, 8>}, {transform_indices = @transform_1, window_bounds = array<i64: 1, 4, 8, 8>}, {transform_indices = @transform_2, window_bounds = array<i64: 1, 4, 8, 8>}, {transform_indices = @transform_3, window_bounds = array<i64: 1, 8, 32>}]} {
    %c0 = arith.constant 0 : index
    %c0_0 = arith.constant 0 : index
    %c0_1 = arith.constant 0 : index
    %c0_2 = arith.constant 0 : index
    %0 = vector.load %arg2[%c0, %c0_0, %c0_1, %c0_2] : memref<1x4x8x8xbf16, #tpu.memory_space<vmem>>, vector<1x4x8x8xbf16>
    %1 = vector.shape_cast %0 : vector<1x4x8x8xbf16> to vector<4x8x8xbf16>
    %2 = arith.extf %1 : vector<4x8x8xbf16> to vector<4x8x8xf32>
    %cst = arith.constant 0.353553385 : f32
    %3 = vector.broadcast %cst : f32 to vector<4x8x8xf32>
    %4 = arith.mulf %2, %3 : vector<4x8x8xf32>
    %5 = arith.truncf %4 : vector<4x8x8xf32> to vector<4x8x8xbf16>
    %c0_3 = arith.constant 0 : index
    %c0_4 = arith.constant 0 : index
    %c0_5 = arith.constant 0 : index
    %c0_6 = arith.constant 0 : index
    %6 = vector.load %arg3[%c0_3, %c0_4, %c0_5, %c0_6] : memref<1x4x8x8xbf16, #tpu.memory_space<vmem>>, vector<1x4x8x8xbf16>
    %7 = vector.shape_cast %6 : vector<1x4x8x8xbf16> to vector<4x8x8xbf16>
    %c0_7 = arith.constant 0 : index
    %c0_8 = arith.constant 0 : index
    %c0_9 = arith.constant 0 : index
    %c0_10 = arith.constant 0 : index
    %8 = vector.load %arg4[%c0_7, %c0_8, %c0_9, %c0_10] : memref<1x4x8x8xbf16, #tpu.memory_space<vmem>>, vector<1x4x8x8xbf16>
    %9 = vector.shape_cast %8 : vector<1x4x8x8xbf16> to vector<4x8x8xbf16>
    %cst_11 = arith.constant dense<0.000000e+00> : vector<4x8x8xf32>
    %10 = tpu.matmul %5, %7, %cst_11 {dimension_numbers = #tpu.dot_dimension_numbers<[2], [2], [1], [1], [0, 0, 0, 1, 1, 1], [0], [0]>} : vector<4x8x8xbf16>, vector<4x8x8xbf16>, vector<4x8x8xf32> -> vector<4x8x8xf32>
    %11 = tpu.iota {dimensions = array<i32: 0>} : vector<8x8xi32>
    %c8_i32 = arith.constant 8 : i32
    %12 = arith.muli %arg1, %c8_i32 : i32
    %13 = vector.broadcast %12 : i32 to vector<8x8xi32>
    %14 = arith.addi %11, %13 : vector<8x8xi32>
    %15 = tpu.iota {dimensions = array<i32: 1>} : vector<8x8xi32>
    %16 = arith.cmpi sle, %15, %14 : vector<8x8xi32>
    %17 = vector.shape_cast %16 : vector<8x8xi1> to vector<1x8x8xi1>
    %cst_12 = arith.constant -1.000000e+30 : f32
    %18 = vector.shape_cast %17 : vector<1x8x8xi1> to vector<1x8x8xi1>
    %19 = vector.broadcast %18 : vector<1x8x8xi1> to vector<4x8x8xi1>
    %20 = vector.broadcast %cst_12 : f32 to vector<4x8x8xf32>
    %21 = arith.select %19, %10, %20 : vector<4x8x8xi1>, vector<4x8x8xf32>
    %cst_13 = arith.constant dense<0xFF800000> : vector<4x8xf32>
    %22 = vector.multi_reduction <maximumf>, %21, %cst_13 [2] : vector<4x8x8xf32> to vector<4x8xf32>
    %23 = vector.shape_cast %22 : vector<4x8xf32> to vector<4x8x1xf32>
    %24 = vector.broadcast %23 : vector<4x8x1xf32> to vector<4x8x8xf32>
    %25 = arith.subf %21, %24 : vector<4x8x8xf32>
    %26 = math.exp %25 : vector<4x8x8xf32>
    %cst_14 = arith.constant dense<0.000000e+00> : vector<4x8xf32>
    %27 = vector.multi_reduction <add>, %26, %cst_14 [2] : vector<4x8x8xf32> to vector<4x8xf32>
    %28 = vector.shape_cast %27 : vector<4x8xf32> to vector<4x8x1xf32>
    %29 = arith.truncf %26 : vector<4x8x8xf32> to vector<4x8x8xbf16>
    %cst_15 = arith.constant dense<0.000000e+00> : vector<4x8x8xf32>
    %30 = tpu.matmul %29, %9, %cst_15 {dimension_numbers = #tpu.dot_dimension_numbers<[2], [1], [1], [2], [0, 0, 0, 1, 1, 2], [0], [0]>} : vector<4x8x8xbf16>, vector<4x8x8xbf16>, vector<4x8x8xf32> -> vector<4x8x8xf32>
    %31 = tpu.reciprocal %28 {approx = true} : vector<4x8x1xf32> -> vector<4x8x1xf32>
    %32 = vector.broadcast %31 : vector<4x8x1xf32> to vector<4x8x8xf32>
    %33 = arith.mulf %30, %32 : vector<4x8x8xf32>
    %34 = vector.extract_strided_slice %33 {offsets = [0, 0, 0], sizes = [1, 8, 8], strides = [1, 1, 1]} : vector<4x8x8xf32> to vector<1x8x8xf32>
    %35 = vector.shape_cast %34 : vector<1x8x8xf32> to vector<8x8xf32>
    %36 = arith.truncf %35 : vector<8x8xf32> to vector<8x8xbf16>
    %c0_16 = arith.constant 0 : index
    %c0_17 = arith.constant 0 : index
    %c0_18 = arith.constant 0 : index
    %37 = vector.load %arg5[%c0_16, %c0_17, %c0_18] : memref<1x8x32xbf16, #tpu.memory_space<vmem>>, vector<1x8x8xbf16>
    %38 = vector.shape_cast %37 : vector<1x8x8xbf16> to vector<8x8xbf16>
    %39 = vector.shape_cast %36 : vector<8x8xbf16> to vector<1x8x8xbf16>
    tpu.vector_store %arg5[%c0_16, %c0_17, %c0_18], %39 {strides = array<i32>} : memref<1x8x32xbf16, #tpu.memory_space<vmem>>, vector<1x8x8xbf16>,
    %40 = vector.extract_strided_slice %33 {offsets = [1, 0, 0], sizes = [1, 8, 8], strides = [1, 1, 1]} : vector<4x8x8xf32> to vector<1x8x8xf32>
    %41 = vector.shape_cast %40 : vector<1x8x8xf32> to vector<8x8xf32>
    %42 = arith.truncf %41 : vector<8x8xf32> to vector<8x8xbf16>
    %c0_19 = arith.constant 0 : index
    %c0_20 = arith.constant 0 : index
    %c8 = arith.constant 8 : index
    %43 = vector.load %arg5[%c0_19, %c0_20, %c8] : memref<1x8x32xbf16, #tpu.memory_space<vmem>>, vector<1x8x8xbf16>
    %44 = vector.shape_cast %43 : vector<1x8x8xbf16> to vector<8x8xbf16>
    %45 = vector.shape_cast %42 : vector<8x8xbf16> to vector<1x8x8xbf16>
    tpu.vector_store %arg5[%c0_19, %c0_20, %c8], %45 {strides = array<i32>} : memref<1x8x32xbf16, #tpu.memory_space<vmem>>, vector<1x8x8xbf16>,
    %46 = vector.extract_strided_slice %33 {offsets = [2, 0, 0], sizes = [1, 8, 8], strides = [1, 1, 1]} : vector<4x8x8xf32> to vector<1x8x8xf32>
    %47 = vector.shape_cast %46 : vector<1x8x8xf32> to vector<8x8xf32>
    %48 = arith.truncf %47 : vector<8x8xf32> to vector<8x8xbf16>
    %c0_21 = arith.constant 0 : index
    %c0_22 = arith.constant 0 : index
    %c16 = arith.constant 16 : index
    %49 = vector.load %arg5[%c0_21, %c0_22, %c16] : memref<1x8x32xbf16, #tpu.memory_space<vmem>>, vector<1x8x8xbf16>
    %50 = vector.shape_cast %49 : vector<1x8x8xbf16> to vector<8x8xbf16>
    %51 = vector.shape_cast %48 : vector<8x8xbf16> to vector<1x8x8xbf16>
    tpu.vector_store %arg5[%c0_21, %c0_22, %c16], %51 {strides = array<i32>} : memref<1x8x32xbf16, #tpu.memory_space<vmem>>, vector<1x8x8xbf16>,
    %52 = vector.extract_strided_slice %33 {offsets = [3, 0, 0], sizes = [1, 8, 8], strides = [1, 1, 1]} : vector<4x8x8xf32> to vector<1x8x8xf32>
    %53 = vector.shape_cast %52 : vector<1x8x8xf32> to vector<8x8xf32>
    %54 = arith.truncf %53 : vector<8x8xf32> to vector<8x8xbf16>
    %c0_23 = arith.constant 0 : index
    %c0_24 = arith.constant 0 : index
    %c24 = arith.constant 24 : index
    %55 = vector.load %arg5[%c0_23, %c0_24, %c24] : memref<1x8x32xbf16, #tpu.memory_space<vmem>>, vector<1x8x8xbf16>
    %56 = vector.shape_cast %55 : vector<1x8x8xbf16> to vector<8x8xbf16>
    %57 = vector.shape_cast %54 : vector<8x8xbf16> to vector<1x8x8xbf16>
    tpu.vector_store %arg5[%c0_23, %c0_24, %c24], %57 {strides = array<i32>} : memref<1x8x32xbf16, #tpu.memory_space<vmem>>, vector<1x8x8xbf16>,
    return
  }
  func.func @transform_0(%arg0: i32, %arg1: i32) -> (i32, i32, i32, i32) {
    %c0_i32 = arith.constant 0 : i32
    %c0_i32_0 = arith.constant 0 : i32
    %c0_i32_1 = arith.constant 0 : i32
    return %arg0, %c0_i32, %arg1, %c0_i32_0 : i32, i32, i32, i32
  }
  func.func @transform_1(%arg0: i32, %arg1: i32) -> (i32, i32, i32, i32) {
    %c0_i32 = arith.constant 0 : i32
    %c0_i32_0 = arith.constant 0 : i32
    %c0_i32_1 = arith.constant 0 : i32
    %c0_i32_2 = arith.constant 0 : i32
    return %arg0, %c0_i32, %c0_i32_0, %c0_i32_1 : i32, i32, i32, i32
  }
  func.func @transform_2(%arg0: i32, %arg1: i32) -> (i32, i32, i32, i32) {
    %c0_i32 = arith.constant 0 : i32
    %c0_i32_0 = arith.constant 0 : i32
    %c0_i32_1 = arith.constant 0 : i32
    %c0_i32_2 = arith.constant 0 : i32
    return %arg0, %c0_i32, %c0_i32_0, %c0_i32_1 : i32, i32, i32, i32
  }
  func.func @transform_3(%arg0: i32, %arg1: i32) -> (i32, i32, i32) {
    %c0_i32 = arith.constant 0 : i32
    %c0_i32_0 = arith.constant 0 : i32
    return %arg0, %arg1, %c0_i32 : i32, i32, i32
  }
}

module attributes {stable_mosaic.version = 11 : i64} {
  func.func @_linear_kernel(%arg0: i32, %arg1: i32, %arg2: i32, %arg3: memref<16x32xbf16, #tpu.memory_space<vmem>>, %arg4: memref<32x32xbf16, #tpu.memory_space<vmem>>, %arg5: memref<1x32xf32, #tpu.memory_space<vmem>>, %arg6: memref<16x32xbf16, #tpu.memory_space<vmem>>, %arg7: memref<16x32xbf16, #tpu.memory_space<vmem>>) attributes {dimension_semantics = [#tpu.dimension_semantics<parallel>, #tpu.dimension_semantics<parallel>, #tpu.dimension_semantics<arbitrary>], iteration_bounds = array<i64: 1, 1, 1>, scalar_prefetch = 0 : i64, scratch_operands = 0 : i64, tpu.core_type = #tpu.core_type<tc>, window_params = [{transform_indices = @transform_0, window_bounds = array<i64: 16, 32>}, {transform_indices = @transform_1, window_bounds = array<i64: 32, 32>}, {transform_indices = @transform_2, window_bounds = array<i64: 1, 32>}, {transform_indices = @transform_3, window_bounds = array<i64: 16, 32>}, {transform_indices = @transform_4, window_bounds = array<i64: 16, 32>}]} {
    %c0 = arith.constant 0 : index
    %c0_0 = arith.constant 0 : index
    %0 = vector.load %arg3[%c0, %c0_0] : memref<16x32xbf16, #tpu.memory_space<vmem>>, vector<16x32xbf16>
    %c0_1 = arith.constant 0 : index
    %c0_2 = arith.constant 0 : index
    %1 = vector.load %arg4[%c0_1, %c0_2] : memref<32x32xbf16, #tpu.memory_space<vmem>>, vector<32x32xbf16>
    %cst = arith.constant dense<0.000000e+00> : vector<16x32xf32>
    %2 = tpu.matmul %0, %1, %cst {dimension_numbers = #tpu.dot_dimension_numbers<[1], [0], [0], [1], [0, 0, 1, 1], [], []>} : vector<16x32xbf16>, vector<32x32xbf16>, vector<16x32xf32> -> vector<16x32xf32>
    %c0_3 = arith.constant 0 : index
    %c0_4 = arith.constant 0 : index
    %3 = vector.load %arg5[%c0_3, %c0_4] : memref<1x32xf32, #tpu.memory_space<vmem>>, vector<1x32xf32>
    %4 = vector.broadcast %3 : vector<1x32xf32> to vector<16x32xf32>
    %5 = arith.addf %2, %4 : vector<16x32xf32>
    %c0_5 = arith.constant 0 : index
    %c0_6 = arith.constant 0 : index
    %6 = vector.load %arg6[%c0_5, %c0_6] : memref<16x32xbf16, #tpu.memory_space<vmem>>, vector<16x32xbf16>
    %7 = arith.extf %6 : vector<16x32xbf16> to vector<16x32xf32>
    %8 = arith.addf %5, %7 : vector<16x32xf32>
    %9 = arith.truncf %8 : vector<16x32xf32> to vector<16x32xbf16>
    %c0_7 = arith.constant 0 : index
    %c0_8 = arith.constant 0 : index
    %10 = vector.load %arg7[%c0_7, %c0_8] : memref<16x32xbf16, #tpu.memory_space<vmem>>, vector<16x32xbf16>
    tpu.vector_store %arg7[%c0_7, %c0_8], %9 {strides = array<i32>} : memref<16x32xbf16, #tpu.memory_space<vmem>>, vector<16x32xbf16>,
    return
  }
  func.func @transform_0(%arg0: i32, %arg1: i32, %arg2: i32) -> (i32, i32) {
    %c0_i32 = arith.constant 0 : i32
    return %arg0, %arg2 : i32, i32
  }
  func.func @transform_1(%arg0: i32, %arg1: i32, %arg2: i32) -> (i32, i32) {
    %c0_i32 = arith.constant 0 : i32
    return %arg2, %arg1 : i32, i32
  }
  func.func @transform_2(%arg0: i32, %arg1: i32, %arg2: i32) -> (i32, i32) {
    %c0_i32 = arith.constant 0 : i32
    %c0_i32_0 = arith.constant 0 : i32
    return %c0_i32, %arg1 : i32, i32
  }
  func.func @transform_3(%arg0: i32, %arg1: i32, %arg2: i32) -> (i32, i32) {
    %c0_i32 = arith.constant 0 : i32
    return %arg0, %arg1 : i32, i32
  }
  func.func @transform_4(%arg0: i32, %arg1: i32, %arg2: i32) -> (i32, i32) {
    %c0_i32 = arith.constant 0 : i32
    return %arg0, %arg1 : i32, i32
  }
}

module attributes {stable_mosaic.version = 11 : i64} {
  func.func @_linear_kernel(%arg0: i32, %arg1: i32, %arg2: i32, %arg3: memref<16x128xbf16, #tpu.memory_space<vmem>>, %arg4: memref<128x32xbf16, #tpu.memory_space<vmem>>, %arg5: memref<1x32xf32, #tpu.memory_space<vmem>>, %arg6: memref<16x32xbf16, #tpu.memory_space<vmem>>, %arg7: memref<16x32xbf16, #tpu.memory_space<vmem>>) attributes {dimension_semantics = [#tpu.dimension_semantics<parallel>, #tpu.dimension_semantics<parallel>, #tpu.dimension_semantics<arbitrary>], iteration_bounds = array<i64: 1, 1, 1>, scalar_prefetch = 0 : i64, scratch_operands = 0 : i64, tpu.core_type = #tpu.core_type<tc>, window_params = [{transform_indices = @transform_0, window_bounds = array<i64: 16, 128>}, {transform_indices = @transform_1, window_bounds = array<i64: 128, 32>}, {transform_indices = @transform_2, window_bounds = array<i64: 1, 32>}, {transform_indices = @transform_3, window_bounds = array<i64: 16, 32>}, {transform_indices = @transform_4, window_bounds = array<i64: 16, 32>}]} {
    %c0 = arith.constant 0 : index
    %c0_0 = arith.constant 0 : index
    %0 = vector.load %arg3[%c0, %c0_0] : memref<16x128xbf16, #tpu.memory_space<vmem>>, vector<16x128xbf16>
    %c0_1 = arith.constant 0 : index
    %c0_2 = arith.constant 0 : index
    %1 = vector.load %arg4[%c0_1, %c0_2] : memref<128x32xbf16, #tpu.memory_space<vmem>>, vector<128x32xbf16>
    %cst = arith.constant dense<0.000000e+00> : vector<16x32xf32>
    %2 = tpu.matmul %0, %1, %cst {dimension_numbers = #tpu.dot_dimension_numbers<[1], [0], [0], [1], [0, 0, 1, 1], [], []>} : vector<16x128xbf16>, vector<128x32xbf16>, vector<16x32xf32> -> vector<16x32xf32>
    %c0_3 = arith.constant 0 : index
    %c0_4 = arith.constant 0 : index
    %3 = vector.load %arg5[%c0_3, %c0_4] : memref<1x32xf32, #tpu.memory_space<vmem>>, vector<1x32xf32>
    %4 = vector.broadcast %3 : vector<1x32xf32> to vector<16x32xf32>
    %5 = arith.addf %2, %4 : vector<16x32xf32>
    %c0_5 = arith.constant 0 : index
    %c0_6 = arith.constant 0 : index
    %6 = vector.load %arg6[%c0_5, %c0_6] : memref<16x32xbf16, #tpu.memory_space<vmem>>, vector<16x32xbf16>
    %7 = arith.extf %6 : vector<16x32xbf16> to vector<16x32xf32>
    %8 = arith.addf %5, %7 : vector<16x32xf32>
    %9 = arith.truncf %8 : vector<16x32xf32> to vector<16x32xbf16>
    %c0_7 = arith.constant 0 : index
    %c0_8 = arith.constant 0 : index
    %10 = vector.load %arg7[%c0_7, %c0_8] : memref<16x32xbf16, #tpu.memory_space<vmem>>, vector<16x32xbf16>
    tpu.vector_store %arg7[%c0_7, %c0_8], %9 {strides = array<i32>} : memref<16x32xbf16, #tpu.memory_space<vmem>>, vector<16x32xbf16>,
    return
  }
  func.func @transform_0(%arg0: i32, %arg1: i32, %arg2: i32) -> (i32, i32) {
    %c0_i32 = arith.constant 0 : i32
    return %arg0, %arg2 : i32, i32
  }
  func.func @transform_1(%arg0: i32, %arg1: i32, %arg2: i32) -> (i32, i32) {
    %c0_i32 = arith.constant 0 : i32
    return %arg2, %arg1 : i32, i32
  }
  func.func @transform_2(%arg0: i32, %arg1: i32, %arg2: i32) -> (i32, i32) {
    %c0_i32 = arith.constant 0 : i32
    %c0_i32_0 = arith.constant 0 : i32
    return %c0_i32, %arg1 : i32, i32
  }
  func.func @transform_3(%arg0: i32, %arg1: i32, %arg2: i32) -> (i32, i32) {
    %c0_i32 = arith.constant 0 : i32
    return %arg0, %arg1 : i32, i32
  }
  func.func @transform_4(%arg0: i32, %arg1: i32, %arg2: i32) -> (i32, i32) {
    %c0_i32 = arith.constant 0 : i32
    return %arg0, %arg1 : i32, i32
  }
}

module attributes {stable_mosaic.version = 11 : i64} {
  func.func @_linear_kernel(%arg0: i32, %arg1: i32, %arg2: i32, %arg3: memref<16x32xbf16, #tpu.memory_space<vmem>>, %arg4: memref<32x128xbf16, #tpu.memory_space<vmem>>, %arg5: memref<1x128xf32, #tpu.memory_space<vmem>>, %arg6: memref<1x32xf32, #tpu.memory_space<vmem>>, %arg7: memref<1x32xf32, #tpu.memory_space<vmem>>, %arg8: memref<16x128xbf16, #tpu.memory_space<vmem>>, %arg9: memref<16x32xbf16, #tpu.memory_space<vmem>>) attributes {dimension_semantics = [#tpu.dimension_semantics<parallel>, #tpu.dimension_semantics<arbitrary>, #tpu.dimension_semantics<arbitrary>], iteration_bounds = array<i64: 1, 1, 1>, scalar_prefetch = 0 : i64, scratch_operands = 1 : i64, tpu.core_type = #tpu.core_type<tc>, window_params = [{transform_indices = @transform_0, window_bounds = array<i64: 16, 32>}, {transform_indices = @transform_1, window_bounds = array<i64: 32, 128>}, {transform_indices = @transform_2, window_bounds = array<i64: 1, 128>}, {transform_indices = @transform_3, window_bounds = array<i64: 1, 32>}, {transform_indices = @transform_4, window_bounds = array<i64: 1, 32>}, {transform_indices = @transform_5, window_bounds = array<i64: 16, 128>}]} {
    %c0_i32 = arith.constant 0 : i32
    %0 = arith.cmpi eq, %arg1, %c0_i32 : i32
    %1 = arith.extui %0 : i1 to i32
    %c0_i32_0 = arith.constant 0 : i32
    %2 = arith.cmpi ne, %1, %c0_i32_0 : i32
    scf.if %2 {
      %c0_12 = arith.constant 0 : index
      %c0_13 = arith.constant 0 : index
      %24 = vector.load %arg3[%c0_12, %c0_13] : memref<16x32xbf16, #tpu.memory_space<vmem>>, vector<16x32xbf16>
      %25 = arith.extf %24 : vector<16x32xbf16> to vector<16x32xf32>
      %cst_14 = arith.constant dense<0.000000e+00> : vector<16xf32>
      %26 = vector.multi_reduction <add>, %25, %cst_14 [1] : vector<16x32xf32> to vector<16xf32>
      %27 = vector.shape_cast %26 : vector<16xf32> to vector<16x1xf32>
      %cst_15 = arith.constant 3.200000e+01 : f32
      %28 = vector.broadcast %cst_15 : f32 to vector<16x1xf32>
      %29 = arith.divf %27, %28 : vector<16x1xf32>
      %30 = vector.broadcast %29 : vector<16x1xf32> to vector<16x32xf32>
      %31 = arith.subf %25, %30 : vector<16x32xf32>
      %32 = arith.mulf %31, %31 : vector<16x32xf32>
      %cst_16 = arith.constant dense<0.000000e+00> : vector<16xf32>
      %33 = vector.multi_reduction <add>, %32, %cst_16 [1] : vector<16x32xf32> to vector<16xf32>
      %34 = vector.shape_cast %33 : vector<16xf32> to vector<16x1xf32>
      %cst_17 = arith.constant 3.200000e+01 : f32
      %35 = vector.broadcast %cst_17 : f32 to vector<16x1xf32>
      %36 = arith.divf %34, %35 : vector<16x1xf32>
      %37 = vector.broadcast %29 : vector<16x1xf32> to vector<16x32xf32>
      %38 = arith.subf %25, %37 : vector<16x32xf32>
      %cst_18 = arith.constant 9.99999974E-6 : f32
      %39 = vector.broadcast %cst_18 : f32 to vector<16x1xf32>
      %40 = arith.addf %36, %39 : vector<16x1xf32>
      %41 = math.rsqrt %40 : vector<16x1xf32>
      %42 = vector.broadcast %41 : vector<16x1xf32> to vector<16x32xf32>
      %43 = arith.mulf %38, %42 : vector<16x32xf32>
      %c0_19 = arith.constant 0 : index
      %c0_20 = arith.constant 0 : index
      %44 = vector.load %arg6[%c0_19, %c0_20] : memref<1x32xf32, #tpu.memory_space<vmem>>, vector<1x32xf32>
      %45 = vector.broadcast %44 : vector<1x32xf32> to vector<16x32xf32>
      %46 = arith.mulf %43, %45 : vector<16x32xf32>
      %c0_21 = arith.constant 0 : index
      %c0_22 = arith.constant 0 : index
      %47 = vector.load %arg7[%c0_21, %c0_22] : memref<1x32xf32, #tpu.memory_space<vmem>>, vector<1x32xf32>
      %48 = vector.broadcast %47 : vector<1x32xf32> to vector<16x32xf32>
      %49 = arith.addf %46, %48 : vector<16x32xf32>
      %50 = arith.truncf %49 : vector<16x32xf32> to vector<16x32xbf16>
      %c0_23 = arith.constant 0 : index
      %c0_24 = arith.constant 0 : index
      %51 = vector.load %arg9[%c0_23, %c0_24] : memref<16x32xbf16, #tpu.memory_space<vmem>>, vector<16x32xbf16>
      tpu.vector_store %arg9[%c0_23, %c0_24], %50 {strides = array<i32>} : memref<16x32xbf16, #tpu.memory_space<vmem>>, vector<16x32xbf16>,
    } else {
    }
    %c0 = arith.constant 0 : index
    %c0_1 = arith.constant 0 : index
    %3 = vector.load %arg9[%c0, %c0_1] : memref<16x32xbf16, #tpu.memory_space<vmem>>, vector<16x32xbf16>
    %c0_2 = arith.constant 0 : index
    %c0_3 = arith.constant 0 : index
    %4 = vector.load %arg4[%c0_2, %c0_3] : memref<32x128xbf16, #tpu.memory_space<vmem>>, vector<32x128xbf16>
    %cst = arith.constant dense<0.000000e+00> : vector<16x128xf32>
    %5 = tpu.matmul %3, %4, %cst {dimension_numbers = #tpu.dot_dimension_numbers<[1], [0], [0], [1], [0, 0, 1, 1], [], []>} : vector<16x32xbf16>, vector<32x128xbf16>, vector<16x128xf32> -> vector<16x128xf32>
    %c0_4 = arith.constant 0 : index
    %c0_5 = arith.constant 0 : index
    %6 = vector.load %arg5[%c0_4, %c0_5] : memref<1x128xf32, #tpu.memory_space<vmem>>, vector<1x128xf32>
    %7 = vector.broadcast %6 : vector<1x128xf32> to vector<16x128xf32>
    %8 = arith.addf %5, %7 : vector<16x128xf32>
    %9 = arith.mulf %8, %8 : vector<16x128xf32>
    %10 = arith.mulf %8, %9 : vector<16x128xf32>
    %cst_6 = arith.constant 4.471500e-02 : f32
    %11 = vector.broadcast %cst_6 : f32 to vector<16x128xf32>
    %12 = arith.mulf %11, %10 : vector<16x128xf32>
    %13 = arith.addf %8, %12 : vector<16x128xf32>
    %cst_7 = arith.constant 0.797884583 : f32
    %14 = vector.broadcast %cst_7 : f32 to vector<16x128xf32>
    %15 = arith.mulf %14, %13 : vector<16x128xf32>
    %16 = math.tanh %15 : vector<16x128xf32>
    %cst_8 = arith.constant 1.000000e+00 : f32
    %17 = vector.broadcast %cst_8 : f32 to vector<16x128xf32>
    %18 = arith.addf %17, %16 : vector<16x128xf32>
    %cst_9 = arith.constant 5.000000e-01 : f32
    %19 = vector.broadcast %cst_9 : f32 to vector<16x128xf32>
    %20 = arith.mulf %19, %18 : vector<16x128xf32>
    %21 = arith.mulf %8, %20 : vector<16x128xf32>
    %22 = arith.truncf %21 : vector<16x128xf32> to vector<16x128xbf16>
    %c0_10 = arith.constant 0 : index
    %c0_11 = arith.constant 0 : index
    %23 = vector.load %arg8[%c0_10, %c0_11] : memref<16x128xbf16, #tpu.memory_space<vmem>>, vector<16x128xbf16>
    tpu.vector_store %arg8[%c0_10, %c0_11], %22 {strides = array<i32>} : memref<16x128xbf16, #tpu.memory_space<vmem>>, vector<16x128xbf16>,
    return
  }
  func.func @transform_0(%arg0: i32, %arg1: i32, %arg2: i32) -> (i32, i32) {
    %c0_i32 = arith.constant 0 : i32
    return %arg0, %arg2 : i32, i32
  }
  func.func @transform_1(%arg0: i32, %arg1: i32, %arg2: i32) -> (i32, i32) {
    %c0_i32 = arith.constant 0 : i32
    return %arg2, %arg1 : i32, i32
  }
  func.func @transform_2(%arg0: i32, %arg1: i32, %arg2: i32) -> (i32, i32) {
    %c0_i32 = arith.constant 0 : i32
    %c0_i32_0 = arith.constant 0 : i32
    return %c0_i32, %arg1 : i32, i32
  }
  func.func @transform_3(%arg0: i32, %arg1: i32, %arg2: i32) -> (i32, i32) {
    %c0_i32 = arith.constant 0 : i32
    %c0_i32_0 = arith.constant 0 : i32
    return %c0_i32, %arg2 : i32, i32
  }
  func.func @transform_4(%arg0: i32, %arg1: i32, %arg2: i32) -> (i32, i32) {
    %c0_i32 = arith.constant 0 : i32
    %c0_i32_0 = arith.constant 0 : i32
    return %c0_i32, %arg2 : i32, i32
  }
  func.func @transform_5(%arg0: i32, %arg1: i32, %arg2: i32) -> (i32, i32) {
    %c0_i32 = arith.constant 0 : i32
    return %arg0, %arg1 : i32, i32
  }
}

module attributes {stable_mosaic.version = 11 : i64} {
  func.func @_linear_kernel(%arg0: i32, %arg1: i32, %arg2: i32, %arg3: memref<16x32xbf16, #tpu.memory_space<vmem>>, %arg4: memref<32x16xbf16, #tpu.memory_space<vmem>>, %arg5: memref<1x32xf32, #tpu.memory_space<vmem>>, %arg6: memref<1x32xf32, #tpu.memory_space<vmem>>, %arg7: memref<16x16xf32, #tpu.memory_space<vmem>>, %arg8: memref<16x32xbf16, #tpu.memory_space<vmem>>) attributes {dimension_semantics = [#tpu.dimension_semantics<parallel>, #tpu.dimension_semantics<arbitrary>, #tpu.dimension_semantics<arbitrary>], iteration_bounds = array<i64: 1, 1, 1>, scalar_prefetch = 0 : i64, scratch_operands = 1 : i64, tpu.core_type = #tpu.core_type<tc>, window_params = [{transform_indices = @transform_0, window_bounds = array<i64: 16, 32>}, {transform_indices = @transform_1, window_bounds = array<i64: 32, 16>}, {transform_indices = @transform_2, window_bounds = array<i64: 1, 32>}, {transform_indices = @transform_3, window_bounds = array<i64: 1, 32>}, {transform_indices = @transform_4, window_bounds = array<i64: 16, 16>}]} {
    %c0_i32 = arith.constant 0 : i32
    %0 = arith.cmpi eq, %arg1, %c0_i32 : i32
    %1 = arith.extui %0 : i1 to i32
    %c0_i32_0 = arith.constant 0 : i32
    %2 = arith.cmpi ne, %1, %c0_i32_0 : i32
    scf.if %2 {
      %c0_6 = arith.constant 0 : index
      %c0_7 = arith.constant 0 : index
      %7 = vector.load %arg3[%c0_6, %c0_7] : memref<16x32xbf16, #tpu.memory_space<vmem>>, vector<16x32xbf16>
      %8 = arith.extf %7 : vector<16x32xbf16> to vector<16x32xf32>
      %cst_8 = arith.constant dense<0.000000e+00> : vector<16xf32>
      %9 = vector.multi_reduction <add>, %8, %cst_8 [1] : vector<16x32xf32> to vector<16xf32>
      %10 = vector.shape_cast %9 : vector<16xf32> to vector<16x1xf32>
      %cst_9 = arith.constant 3.200000e+01 : f32
      %11 = vector.broadcast %cst_9 : f32 to vector<16x1xf32>
      %12 = arith.divf %10, %11 : vector<16x1xf32>
      %13 = vector.broadcast %12 : vector<16x1xf32> to vector<16x32xf32>
      %14 = arith.subf %8, %13 : vector<16x32xf32>
      %15 = arith.mulf %14, %14 : vector<16x32xf32>
      %cst_10 = arith.constant dense<0.000000e+00> : vector<16xf32>
      %16 = vector.multi_reduction <add>, %15, %cst_10 [1] : vector<16x32xf32> to vector<16xf32>
      %17 = vector.shape_cast %16 : vector<16xf32> to vector<16x1xf32>
      %cst_11 = arith.constant 3.200000e+01 : f32
      %18 = vector.broadcast %cst_11 : f32 to vector<16x1xf32>
      %19 = arith.divf %17, %18 : vector<16x1xf32>
      %20 = vector.broadcast %12 : vector<16x1xf32> to vector<16x32xf32>
      %21 = arith.subf %8, %20 : vector<16x32xf32>
      %cst_12 = arith.constant 9.99999974E-6 : f32
      %22 = vector.broadcast %cst_12 : f32 to vector<16x1xf32>
      %23 = arith.addf %19, %22 : vector<16x1xf32>
      %24 = math.rsqrt %23 : vector<16x1xf32>
      %25 = vector.broadcast %24 : vector<16x1xf32> to vector<16x32xf32>
      %26 = arith.mulf %21, %25 : vector<16x32xf32>
      %c0_13 = arith.constant 0 : index
      %c0_14 = arith.constant 0 : index
      %27 = vector.load %arg5[%c0_13, %c0_14] : memref<1x32xf32, #tpu.memory_space<vmem>>, vector<1x32xf32>
      %28 = vector.broadcast %27 : vector<1x32xf32> to vector<16x32xf32>
      %29 = arith.mulf %26, %28 : vector<16x32xf32>
      %c0_15 = arith.constant 0 : index
      %c0_16 = arith.constant 0 : index
      %30 = vector.load %arg6[%c0_15, %c0_16] : memref<1x32xf32, #tpu.memory_space<vmem>>, vector<1x32xf32>
      %31 = vector.broadcast %30 : vector<1x32xf32> to vector<16x32xf32>
      %32 = arith.addf %29, %31 : vector<16x32xf32>
      %33 = arith.truncf %32 : vector<16x32xf32> to vector<16x32xbf16>
      %c0_17 = arith.constant 0 : index
      %c0_18 = arith.constant 0 : index
      %34 = vector.load %arg8[%c0_17, %c0_18] : memref<16x32xbf16, #tpu.memory_space<vmem>>, vector<16x32xbf16>
      tpu.vector_store %arg8[%c0_17, %c0_18], %33 {strides = array<i32>} : memref<16x32xbf16, #tpu.memory_space<vmem>>, vector<16x32xbf16>,
    } else {
    }
    %c0 = arith.constant 0 : index
    %c0_1 = arith.constant 0 : index
    %3 = vector.load %arg8[%c0, %c0_1] : memref<16x32xbf16, #tpu.memory_space<vmem>>, vector<16x32xbf16>
    %c0_2 = arith.constant 0 : index
    %c0_3 = arith.constant 0 : index
    %4 = vector.load %arg4[%c0_2, %c0_3] : memref<32x16xbf16, #tpu.memory_space<vmem>>, vector<32x16xbf16>
    %cst = arith.constant dense<0.000000e+00> : vector<16x16xf32>
    %5 = tpu.matmul %3, %4, %cst {dimension_numbers = #tpu.dot_dimension_numbers<[1], [0], [0], [1], [0, 0, 1, 1], [], []>} : vector<16x32xbf16>, vector<32x16xbf16>, vector<16x16xf32> -> vector<16x16xf32>
    %c0_4 = arith.constant 0 : index
    %c0_5 = arith.constant 0 : index
    %6 = vector.load %arg7[%c0_4, %c0_5] : memref<16x16xf32, #tpu.memory_space<vmem>>, vector<16x16xf32>
    tpu.vector_store %arg7[%c0_4, %c0_5], %5 {strides = array<i32>} : memref<16x16xf32, #tpu.memory_space<vmem>>, vector<16x16xf32>,
    return
  }
  func.func @transform_0(%arg0: i32, %arg1: i32, %arg2: i32) -> (i32, i32) {
    %c0_i32 = arith.constant 0 : i32
    return %arg0, %arg2 : i32, i32
  }
  func.func @transform_1(%arg0: i32, %arg1: i32, %arg2: i32) -> (i32, i32) {
    %c0_i32 = arith.constant 0 : i32
    return %arg2, %arg1 : i32, i32
  }
  func.func @transform_2(%arg0: i32, %arg1: i32, %arg2: i32) -> (i32, i32) {
    %c0_i32 = arith.constant 0 : i32
    %c0_i32_0 = arith.constant 0 : i32
    return %c0_i32, %arg2 : i32, i32
  }
  func.func @transform_3(%arg0: i32, %arg1: i32, %arg2: i32) -> (i32, i32) {
    %c0_i32 = arith.constant 0 : i32
    %c0_i32_0 = arith.constant 0 : i32
    return %c0_i32, %arg2 : i32, i32
  }
  func.func @transform_4(%arg0: i32, %arg1: i32, %arg2: i32) -> (i32, i32) {
    %c0_i32 = arith.constant 0 : i32
    return %arg0, %arg1 : i32, i32
  }
}

module attributes {stable_mosaic.version = 11 : i64} {
  func.func @_linear_kernel(%arg0: i32, %arg1: i32, %arg2: i32, %arg3: memref<16x32xbf16, #tpu.memory_space<vmem>>, %arg4: memref<32x16xbf16, #tpu.memory_space<vmem>>, %arg5: memref<1x32xf32, #tpu.memory_space<vmem>>, %arg6: memref<1x32xf32, #tpu.memory_space<vmem>>, %arg7: memref<16x16xf32, #tpu.memory_space<vmem>>, %arg8: memref<16x32xbf16, #tpu.memory_space<vmem>>) attributes {dimension_semantics = [#tpu.dimension_semantics<parallel>, #tpu.dimension_semantics<arbitrary>, #tpu.dimension_semantics<arbitrary>], iteration_bounds = array<i64: 1, 1, 1>, scalar_prefetch = 0 : i64, scratch_operands = 1 : i64, tpu.core_type = #tpu.core_type<tc>, window_params = [{transform_indices = @transform_0, window_bounds = array<i64: 16, 32>}, {transform_indices = @transform_1, window_bounds = array<i64: 32, 16>}, {transform_indices = @transform_2, window_bounds = array<i64: 1, 32>}, {transform_indices = @transform_3, window_bounds = array<i64: 1, 32>}, {transform_indices = @transform_4, window_bounds = array<i64: 16, 16>}]} {
    %c0_i32 = arith.constant 0 : i32
    %0 = arith.cmpi eq, %arg1, %c0_i32 : i32
    %1 = arith.extui %0 : i1 to i32
    %c0_i32_0 = arith.constant 0 : i32
    %2 = arith.cmpi ne, %1, %c0_i32_0 : i32
    scf.if %2 {
      %c0_6 = arith.constant 0 : index
      %c0_7 = arith.constant 0 : index
      %7 = vector.load %arg3[%c0_6, %c0_7] : memref<16x32xbf16, #tpu.memory_space<vmem>>, vector<16x32xbf16>
      %8 = arith.extf %7 : vector<16x32xbf16> to vector<16x32xf32>
      %cst_8 = arith.constant dense<0.000000e+00> : vector<16xf32>
      %9 = vector.multi_reduction <add>, %8, %cst_8 [1] : vector<16x32xf32> to vector<16xf32>
      %10 = vector.shape_cast %9 : vector<16xf32> to vector<16x1xf32>
      %cst_9 = arith.constant 3.200000e+01 : f32
      %11 = vector.broadcast %cst_9 : f32 to vector<16x1xf32>
      %12 = arith.divf %10, %11 : vector<16x1xf32>
      %13 = vector.broadcast %12 : vector<16x1xf32> to vector<16x32xf32>
      %14 = arith.subf %8, %13 : vector<16x32xf32>
      %15 = arith.mulf %14, %14 : vector<16x32xf32>
      %cst_10 = arith.constant dense<0.000000e+00> : vector<16xf32>
      %16 = vector.multi_reduction <add>, %15, %cst_10 [1] : vector<16x32xf32> to vector<16xf32>
      %17 = vector.shape_cast %16 : vector<16xf32> to vector<16x1xf32>
      %cst_11 = arith.constant 3.200000e+01 : f32
      %18 = vector.broadcast %cst_11 : f32 to vector<16x1xf32>
      %19 = arith.divf %17, %18 : vector<16x1xf32>
      %20 = vector.broadcast %12 : vector<16x1xf32> to vector<16x32xf32>
      %21 = arith.subf %8, %20 : vector<16x32xf32>
      %cst_12 = arith.constant 9.99999974E-6 : f32
      %22 = vector.broadcast %cst_12 : f32 to vector<16x1xf32>
      %23 = arith.addf %19, %22 : vector<16x1xf32>
      %24 = math.rsqrt %23 : vector<16x1xf32>
      %25 = vector.broadcast %24 : vector<16x1xf32> to vector<16x32xf32>
      %26 = arith.mulf %21, %25 : vector<16x32xf32>
      %c0_13 = arith.constant 0 : index
      %c0_14 = arith.constant 0 : index
      %27 = vector.load %arg5[%c0_13, %c0_14] : memref<1x32xf32, #tpu.memory_space<vmem>>, vector<1x32xf32>
      %28 = vector.broadcast %27 : vector<1x32xf32> to vector<16x32xf32>
      %29 = arith.mulf %26, %28 : vector<16x32xf32>
      %c0_15 = arith.constant 0 : index
      %c0_16 = arith.constant 0 : index
      %30 = vector.load %arg6[%c0_15, %c0_16] : memref<1x32xf32, #tpu.memory_space<vmem>>, vector<1x32xf32>
      %31 = vector.broadcast %30 : vector<1x32xf32> to vector<16x32xf32>
      %32 = arith.addf %29, %31 : vector<16x32xf32>
      %33 = arith.truncf %32 : vector<16x32xf32> to vector<16x32xbf16>
      %c0_17 = arith.constant 0 : index
      %c0_18 = arith.constant 0 : index
      %34 = vector.load %arg8[%c0_17, %c0_18] : memref<16x32xbf16, #tpu.memory_space<vmem>>, vector<16x32xbf16>
      tpu.vector_store %arg8[%c0_17, %c0_18], %33 {strides = array<i32>} : memref<16x32xbf16, #tpu.memory_space<vmem>>, vector<16x32xbf16>,
    } else {
    }
    %c0 = arith.constant 0 : index
    %c0_1 = arith.constant 0 : index
    %3 = vector.load %arg8[%c0, %c0_1] : memref<16x32xbf16, #tpu.memory_space<vmem>>, vector<16x32xbf16>
    %c0_2 = arith.constant 0 : index
    %c0_3 = arith.constant 0 : index
    %4 = vector.load %arg4[%c0_2, %c0_3] : memref<32x16xbf16, #tpu.memory_space<vmem>>, vector<32x16xbf16>
    %cst = arith.constant dense<0.000000e+00> : vector<16x16xf32>
    %5 = tpu.matmul %3, %4, %cst {dimension_numbers = #tpu.dot_dimension_numbers<[1], [0], [0], [1], [0, 0, 1, 1], [], []>} : vector<16x32xbf16>, vector<32x16xbf16>, vector<16x16xf32> -> vector<16x16xf32>
    %c0_4 = arith.constant 0 : index
    %c0_5 = arith.constant 0 : index
    %6 = vector.load %arg7[%c0_4, %c0_5] : memref<16x16xf32, #tpu.memory_space<vmem>>, vector<16x16xf32>
    tpu.vector_store %arg7[%c0_4, %c0_5], %5 {strides = array<i32>} : memref<16x16xf32, #tpu.memory_space<vmem>>, vector<16x16xf32>,
    return
  }
  func.func @transform_0(%arg0: i32, %arg1: i32, %arg2: i32) -> (i32, i32) {
    %c0_i32 = arith.constant 0 : i32
    return %arg0, %arg2 : i32, i32
  }
  func.func @transform_1(%arg0: i32, %arg1: i32, %arg2: i32) -> (i32, i32) {
    %c0_i32 = arith.constant 0 : i32
    return %arg2, %arg1 : i32, i32
  }
  func.func @transform_2(%arg0: i32, %arg1: i32, %arg2: i32) -> (i32, i32) {
    %c0_i32 = arith.constant 0 : i32
    %c0_i32_0 = arith.constant 0 : i32
    return %c0_i32, %arg2 : i32, i32
  }
  func.func @transform_3(%arg0: i32, %arg1: i32, %arg2: i32) -> (i32, i32) {
    %c0_i32 = arith.constant 0 : i32
    %c0_i32_0 = arith.constant 0 : i32
    return %c0_i32, %arg2 : i32, i32
  }
  func.func @transform_4(%arg0: i32, %arg1: i32, %arg2: i32) -> (i32, i32) {
    %c0_i32 = arith.constant 0 : i32
    return %arg0, %arg1 : i32, i32
  }
}

</mosaic_0001>

<bundles_post_ra>
// kernel: encoder_decoder_gpt_forward.25
= control target key start
LH: loop header
LB: loop body
LE: loop exit
PB: predicated region body
PF: predicated region fallthrough
CT: control target
= control target key end

     0   :  { %vm29_vm0 = vcmask 261120   ;;  %v194_v16 = vmov 0.0   ;;  %vm195_vm1 = vmmov 0   ;;  %vm154_vm2 = vcmask 781312   ;;  %s256_s0 = inlined_call_operand.vmem [shape: bf16[16,32], index: 0, kind: input, shape index: {}]   ;;  %s257_s1 = inlined_call_operand.vmem [shape: bf16[32,96], index: 1, kind: input, shape index: {}]   ;;  %s258_s3 = inlined_call_operand.vmem [shape: f32[1,32], index: 3, kind: input, shape index: {}]   ;;  %s259_s4 = inlined_call_operand.vmem [shape: f32[1,32], index: 4, kind: input, shape index: {}]   ;;  %s260_s2 = inlined_call_operand.vmem [shape: f32[1,96], index: 2, kind: input, shape index: {}]   ;;  %s261_s5 = inlined_call_operand.vmem [shape: bf16[16,96], index: 5, kind: output, shape index: {}]  }
   0x1   :  { %v172_v0 = vld [vmem:[%s256_s0] sm:$0xff]   ;;  %178 = vmatprep.subr.bf16.mxu0 %v194_v16  ;;  %v189_v17 = vld [vmem:[%s257_s1 + $0x8] sm:$0xff]   ;;  %182 = vmatprep.mubr.msk.bf16.mxu0 %vm195_vm1, %v194_v16 }
   0x2   :  { %v173_v1 = vunpack.c.l.bf16 %v172_v0  ;;  %v174_v2 = vunpack.c.h.bf16 %v172_v0  ;;  %v188_v15 = vld [vmem:[%s257_s1] sm:$0xff]  }
   0x3   :  { %179 = vmatpush3.bf16.msra.mxu0 %v188_v15  ;;  %v161_v26 = vld [vmem:[%s258_s3] ss:$0 sm:$0xff] }
   0x4   :  { %v30_v3 = vsel %vm29_vm0, %v173_v1, 0.0  ;;  %v33_v4 = vsel %vm29_vm0, %v174_v2, 0.0  ;;  %180 = vmatprep.subr.bf16.mxu0 %v194_v16  ;;  %v162_v30 = vld [vmem:[%s259_s4] ss:$0 sm:$0xff] }
   0x5   :  { %31 = vadd.xlane.f32.xlu0 %v30_v3  ;;  %v163_v36 = vld [vmem:[%s260_s2] ss:$0 sm:$0xff] }
   0x7   :  { %181 = vmatpush3.bf16.msra.mxu0 %v189_v17 }
   0x9   :  { %34 = vadd.xlane.f32.xlu0 %v33_v4 }
  0x92   :  { %v32_v5 = vpop.xlane.xlu0 %31 }
  0x93   :  { %v37_v6 = vmul.f32 0.03125, %v32_v5 }
  0x95   :  { %v39_v7 = vsub.f32 %v173_v1, %v37_v6 }
  0x96   :  { %v35_v8 = vpop.xlane.xlu0 %34 }
  0x97   :  { %v38_v9 = vmul.f32 0.03125, %v35_v8  ;;  %v41_v10 = vmul.f32 %v39_v7, %v39_v7 }
  0x99   :  { %v40_v11 = vsub.f32 %v174_v2, %v38_v9  ;;  %v43_v12 = vsel %vm29_vm0, %v41_v10, 0.0 }
  0x9a   :  { %44 = vadd.xlane.f32.xlu1 %v43_v12 }
  0x9b   :  { %v42_v13 = vmul.f32 %v40_v11, %v40_v11 }
  0x9d   :  { %v46_v14 = vsel %vm29_vm0, %v42_v13, 0.0 }
  0x9e   :  { %47 = vadd.xlane.f32.xlu1 %v46_v14 }
 0x127   :  { %v45_v18 = vpop.xlane.xlu1 %44 }
 0x128   :  { %v49_v19 = vmul.f32 0.03125, %v45_v18 }
 0x12a   :  { %v51_v20 = vadd.f32 1e-05, %v49_v19 }
 0x12b   :  { %v48_v21 = vpop.xlane.xlu1 %47 }
 0x12c   :  { %190 = vrsqrt.f32 %v51_v20  ;;  %v50_v22 = vmul.f32 0.03125, %v48_v21 }
 0x12e   :  { %v52_v23 = vadd.f32 1e-05, %v50_v22 }
 0x130   :  { %192 = vrsqrt.f32 %v52_v23 }
 0x136   :  { %v191_v24 = vpop.eup %190 }
 0x137   :  { %v55_v25 = vmul.f32 %v191_v24, %v39_v7 }
 0x139   :  { %v64_v28 = vmul.f32 %v161_v26, %v55_v25 }
 0x13a   :  { %v193_v27 = vpop.eup %192 }
 0x13b   :  { %v56_v29 = vmul.f32 %v193_v27, %v40_v11  ;;  %v73_v32 = vadd.f32 %v162_v30, %v64_v28 }
 0x13d   :  { %v65_v31 = vmul.f32 %v161_v26, %v56_v29 }
 0x13f   :  { %v74_v33 = vadd.f32 %v162_v30, %v65_v31 }
 0x141   :  { %v75_v34 = vpack.c.bf16 %v74_v33, %v73_v32 }
 0x143   :  { %76 = vst.msk [vmem:[#allocation2] sm:$0xff] %vm29_vm0, %v75_v34 }
 0x14a   :  { %v77_v35 = vld [vmem:[#allocation2] sm:$0xff] }
 0x14b   :  { %183 = vmatmul.mubr.msk.bf16.vlgmr.msra.gmra.mrb[0].mxu0 %vm29_vm0, %v77_v35 }
 0x21e   :  { %v139_v37 = vpop.f32.mrb[0].mxu0 }
 0x21f   :  { %v140_v38 = vadd.f32 %v163_v36, %v139_v37  ;;  %v184_v39 = vpop.f32.mrb[1].mxu0 }
 0x220   :  { %v142_v40 = vpop.f32.mrb[2].mxu0 }
 0x221   :  { %v169_v41 = vpack.c.bf16 %v140_v38, %v140_v38  ;;  %v143_v42 = vadd.f32 %v163_v36, %v142_v40  ;;  %v185_v43 = vpop.f32.mrb[3].mxu0 }
 0x223   :  { %155 = vst.msk [vmem:[%s261_s5] sm:$0xf] %vm154_vm2, %v169_v41  ;;  %v170_v44 = vpack.c.bf16 %v143_v42, %v143_v42 }
 0x225   :  { %156 = vst.msk [vmem:[%s261_s5 + $0x4] sm:$0xf] %vm154_vm2, %v170_v44 }

// kernel: encoder_decoder_gpt_forward.24
= control target key start
LH: loop header
LB: loop body
LE: loop exit
PB: predicated region body
PF: predicated region fallthrough
CT: control target
= control target key end

     0   :  { %v124_v0 = vmov 0.0   ;;  %vm125_vm0 = vmmov 0   ;;  %vm36_vm1 = vcmask 130048   ;;  %vm95_vm2 = vcmask 257024   ;;  %s172_s1 = inlined_call_operand.vmem [shape: bf16[16,32], index: 1, kind: input, shape index: {}]   ;;  %s173_s0 = inlined_call_operand.vmem [shape: f32[16,16], index: 0, kind: input, shape index: {}]   ;;  %s174_s3 = inlined_call_operand.vmem [shape: bf16[16,32], index: 3, kind: input, shape index: {}]   ;;  %s175_s2 = inlined_call_operand.vmem [shape: f32[1,32], index: 2, kind: input, shape index: {}]   ;;  %s176_s4 = inlined_call_operand.vmem [shape: bf16[16,32], index: 4, kind: output, shape index: {}]  }
   0x1   :  { %115 = vmatprep.subr.bf16.mxu0 %v124_v0  ;;  %v123_v1 = vld [vmem:[%s172_s1] sm:$0xff]   ;;  %117 = vmatprep.mubr.msk.bf16.mxu0 %vm125_vm0, %v124_v0  ;;  %v19_v3 = vld [vmem:[%s173_s0 + $0x8] sm:$0xff] }
   0x2   :  { %v18_v2 = vld [vmem:[%s173_s0] sm:$0xff]  ;;  %116 = vmatpush3.bf16.msra.mxu0 %v123_v1 }
   0x3   :  { %v20_v4 = vpack.c.bf16 %v19_v3, %v18_v2  ;;  %v110_v5 = vld [vmem:[%s174_s3] sm:$0xff]  }
   0x4   :  { %v102_v6 = vld [vmem:[%s175_s2] ss:$0 sm:$0xff]  ;;  %v111_v7 = vunpack.c.l.bf16 %v110_v5  ;;  %v112_v11 = vunpack.c.h.bf16 %v110_v5 }
   0x5   :  { %118 = vmatmul.mubr.msk.bf16.vlgmr.msra.gmra.mrb[0].mxu0 %vm36_vm1, %v20_v4 }
  0xd8   :  { %v74_v8 = vpop.f32.mrb[0].mxu0 }
  0xd9   :  { %v75_v9 = vadd.f32 %v102_v6, %v74_v8  ;;  %v119_v10 = vpop.f32.mrb[1].mxu0 }
  0xda   :  { %v77_v12 = vpop.f32.mrb[2].mxu0 }
  0xdb   :  { %v85_v13 = vadd.f32 %v111_v7, %v75_v9  ;;  %v78_v14 = vadd.f32 %v102_v6, %v77_v12  ;;  %v120_v15 = vpop.f32.mrb[3].mxu0 }
  0xdd   :  { %v107_v16 = vpack.c.bf16 %v85_v13, %v85_v13  ;;  %v86_v17 = vadd.f32 %v112_v11, %v78_v14 }
  0xdf   :  { %96 = vst.msk [vmem:[%s176_s4] sm:$0xf] %vm95_vm2, %v107_v16  ;;  %v108_v18 = vpack.c.bf16 %v86_v17, %v86_v17 }
  0xe1   :  { %97 = vst.msk [vmem:[%s176_s4 + $0x4] sm:$0xf] %vm95_vm2, %v108_v18 }

// kernel: encoder_decoder_gpt_forward.27
= control target key start
LH: loop header
LB: loop body
LE: loop exit
PB: predicated region body
PF: predicated region fallthrough
CT: control target
= control target key end

     0   :  { %v143_v0 = vmov 0.0   ;;  %vm144_vm0 = vmmov 0   ;;  %vm48_vm1 = vcmask 261120   ;;  %vm107_vm2 = vcmask 257024   ;;  %s191_s1 = inlined_call_operand.vmem [shape: bf16[32,32], index: 1, kind: input, shape index: {}]   ;;  %s192_s0 = inlined_call_operand.vmem [shape: bf16[16,32], index: 0, kind: input, shape index: {}]   ;;  %s193_s3 = inlined_call_operand.vmem [shape: bf16[16,32], index: 3, kind: input, shape index: {}]   ;;  %s194_s2 = inlined_call_operand.vmem [shape: f32[1,32], index: 2, kind: input, shape index: {}]   ;;  %s195_s4 = inlined_call_operand.vmem [shape: bf16[16,32], index: 4, kind: output, shape index: {}]  }
   0x1   :  { %130 = vmatprep.subr.bf16.mxu0 %v143_v0  ;;  %v140_v1 = vld [vmem:[%s191_s1] sm:$0xff]   ;;  %134 = vmatprep.mubr.msk.bf16.mxu0 %vm144_vm0, %v143_v0  ;;  %v141_v2 = vld [vmem:[%s191_s1 + $0x8] sm:$0xff]  }
   0x2   :  { %131 = vmatpush3.bf16.msra.mxu0 %v140_v1  ;;  %v142_v3 = vld [vmem:[%s192_s0] sm:$0xff]  }
   0x3   :  { %132 = vmatprep.subr.bf16.mxu0 %v143_v0  ;;  %v124_v4 = vld [vmem:[%s193_s3] sm:$0xff]  }
   0x4   :  { %v114_v5 = vld [vmem:[%s194_s2] ss:$0 sm:$0xff]  ;;  %v125_v6 = vunpack.c.l.bf16 %v124_v4  ;;  %v126_v10 = vunpack.c.h.bf16 %v124_v4 }
   0x6   :  { %133 = vmatpush3.bf16.msra.mxu0 %v141_v2 }
   0x9   :  { %135 = vmatmul.mubr.msk.bf16.vlgmr.msra.gmra.mrb[0].mxu0 %vm48_vm1, %v142_v3 }
  0xdc   :  { %v86_v7 = vpop.f32.mrb[0].mxu0 }
  0xdd   :  { %v87_v8 = vadd.f32 %v114_v5, %v86_v7  ;;  %v136_v9 = vpop.f32.mrb[1].mxu0 }
  0xde   :  { %v89_v11 = vpop.f32.mrb[2].mxu0 }
  0xdf   :  { %v97_v12 = vadd.f32 %v125_v6, %v87_v8  ;;  %v90_v13 = vadd.f32 %v114_v5, %v89_v11  ;;  %v137_v14 = vpop.f32.mrb[3].mxu0 }
  0xe1   :  { %v121_v15 = vpack.c.bf16 %v97_v12, %v97_v12  ;;  %v98_v16 = vadd.f32 %v126_v10, %v90_v13 }
  0xe3   :  { %108 = vst.msk [vmem:[%s195_s4] sm:$0xf] %vm107_vm2, %v121_v15  ;;  %v122_v17 = vpack.c.bf16 %v98_v16, %v98_v16 }
  0xe5   :  { %109 = vst.msk [vmem:[%s195_s4 + $0x4] sm:$0xf] %vm107_vm2, %v122_v17 }

// kernel: encoder_decoder_gpt_forward.26
= control target key start
LH: loop header
LB: loop body
LE: loop exit
PB: predicated region body
PF: predicated region fallthrough
CT: control target
= control target key end

     0   :  { %s1026_s12 = smov 0   ;;  %s1028_s13 = smov 0   ;;  %s1128_s0 = inlined_call_operand.vmem [shape: bf16[2,4,8,8], index: 0, kind: input, shape index: {}]   ;;  %s1129_s1 = inlined_call_operand.vmem [shape: bf16[2,4,8,8], index: 1, kind: input, shape index: {}]   ;;  %s1130_s2 = inlined_call_operand.vmem [shape: bf16[2,4,8,8], index: 2, kind: input, shape index: {}]   ;;  %s1131_s3 = inlined_call_operand.vmem [shape: bf16[2,8,32], index: 3, kind: output, shape index: {}]  }
   0x1   :  { %s1030_s14 = smov 0  }
   0x2 LB: > { %s25_s15 = sadd.s32 1, %s995_s13  ;;  %p832_p0 = scmp.ge.s32.totalorder %s999_s14, 1  ;;  %s999_s14 = sphi %s1030_s14, %s13_s14   ;;  %s995_s13 = sphi %s1028_s13, %s1133_s13   ;;  %s991_s12 = sphi %s1026_s12, %s1132_s12  }
   0x3   : > { %p27_p1 = scmp.ge.s32.totalorder %s25_s15, 2  ;;  %p176_p2 = scmp.lt.s32.totalorder %s999_s14, 3 }
   0x5   : > { %s1135_s15 = smov (%p27_p1, %s25_s15), 0  ;;  %p177_p3 = pnand %p832_p0, %p176_p2 }
   0x6   : > { %p215_p4 = scmp.lt.s32.totalorder (!%p177_p3), %s991_s12, 1  ;;  %v1001_v0 = vmov (!%p177_p3), 0.0   ;;  %vm1002_vm0 = vmmov (!%p177_p3), 0   ;;  %vm265_vm1 = vcmask (!%p177_p3), 64512   ;;  %v450_v23 = vlaneseq (!%p177_p3)  ;;  %s1003_s30 = smov (!%p177_p3), 8  }
   0x7   : > { %180 = sbr.rel (%p177_p3) target bundleno = 743 (0x2e7), region = 32  ;;  %884 = vmatprep.subr.bf16.mxu0 (!%p177_p3), %v1001_v0  ;;  %890 = vmatprep.subr.bf16.mxu1 (!%p177_p3), %v1001_v0  ;;  %vm507_vm3 = vcmask (!%p177_p3), 1043456   ;;  %vm698_vm4 = vcmask (!%p177_p3), 60416   ;;  %s1004_s4 = smov (!%p177_p3), 16   ;;  %vm707_vm5 = vcmask (!%p177_p3), 126016   ;;  %vm716_vm6 = vcmask (!%p177_p3), 191616  }
   0x8   : > { %886 = vmatprep.mubr.msk.bf16.mxu0 (!%p177_p3), %vm1002_vm0, %v1001_v0  ;;  %892 = vmatprep.mubr.msk.bf16.mxu1 (!%p177_p3), %vm1002_vm0, %v1001_v0  ;;  %v451_v24 = vshrl.u32 (!%p177_p3), %v450_v23, 7  ;;  %v456_v25 = vand.u32 (!%p177_p3), 127, %v450_v23  ;;  %s1005_s5 = smov (!%p177_p3), 24   ;;  %vm725_vm7 = vcmask (!%p177_p3), 257216  }
   0xa   : > { %vm457_vm2 = vcmp.le.s32.totalorder (!%p177_p3), %v456_v25, %v451_v24 }
   0xe   : > { %s1137_s12 = smov (!%p215_p4, %s991_s12), 1 }
   0xf   : > { %s1053_s16 = sshll.u32 %s1137_s12, 4  ;;  %s839_s26 = sshll.u32 %s1137_s12, 2 }
  0x10   : > { %s222_s19 = scalar_lea.vmem %s1128_s0, %s1053_s16  ;;  %s227_s22 = scalar_lea.vmem %s1129_s1, %s1053_s16 }
  0x11   : > { %v257_v1 = vld [vmem:[%s227_s22] sm:$0xf]  ;;  %v258_v2 = vld [vmem:[%s227_s22 + $0x4] sm:$0xf]  ;;  %v867_v6 = vld [vmem:[%s222_s19 + $0x8] sm:$0xff]   ;;  %s232_s25 = scalar_lea.vmem %s1130_s2, %s1053_s16  ;;  %s1113_s29 = scalar_lea.vmem %s1131_s3, %s839_s26 }
  0x12   : > { %v270_v3 = vsel %vm265_vm1, %v257_v1, 0  ;;  %v316_v4 = vsel %vm265_vm1, %v258_v2, 0  ;;  %v860_v5 = vld [vmem:[%s222_s19] sm:$0xff]   ;;  %v259_v9 = vld [vmem:[%s227_s22 + $0x8] sm:$0xf]  ;;  %v865_v13 = vunpack.c.l.bf16 %v867_v6  ;;  %v866_v14 = vunpack.c.h.bf16 %v867_v6 }
  0x13   : > { %885 = vmatpush3.bf16.xpose.msra.mxu0 %v270_v3  ;;  %891 = vmatpush3.bf16.xpose.msra.mxu1 %v316_v4  ;;  %v861_v7 = vunpack.c.l.bf16 %v860_v5  ;;  %v862_v8 = vunpack.c.h.bf16 %v860_v5  ;;  %v260_v12 = vld [vmem:[%s227_s22 + $0xc] sm:$0xf]  ;;  %v362_v17 = vsel %vm265_vm1, %v259_v9, 0  ;;  %v261_v50 = vld [vmem:[%s232_s25] sm:$0xf] }
  0x14   : > { %896 = vmatprep.subr.bf16.mxu0 %v1001_v0  ;;  %902 = vmatprep.subr.bf16.mxu1 %v1001_v0  ;;  %v408_v18 = vsel %vm265_vm1, %v260_v12, 0  ;;  %v251_v19 = vmul.f32 0.35355338, %v865_v13  ;;  %v252_v20 = vmul.f32 0.35355338, %v866_v14  ;;  %v509_v51 = vsel %vm507_vm3, %v261_v50, 0 }
  0x15   : > { %v249_v10 = vmul.f32 0.35355338, %v861_v7  ;;  %v250_v11 = vmul.f32 0.35355338, %v862_v8  ;;  %v262_v52 = vld [vmem:[%s232_s25 + $0x4] sm:$0xf] }
  0x16   : > { %v255_v21 = vpack.c.bf16 %v251_v19, %v251_v19  ;;  %v256_v22 = vpack.c.bf16 %v252_v20, %v252_v20  ;;  %v555_v53 = vsel %vm507_vm3, %v262_v52, 0  ;;  %v263_v54 = vld [vmem:[%s232_s25 + $0x8] sm:$0xf]  ;;  %v264_v56 = vld [vmem:[%s232_s25 + $0xc] sm:$0xf] }
  0x17   : > { %v253_v15 = vpack.c.bf16 %v249_v10, %v249_v10  ;;  %v254_v16 = vpack.c.bf16 %v250_v11, %v250_v11  ;;  %v601_v55 = vsel %vm507_vm3, %v263_v54, 0  ;;  %v647_v57 = vsel %vm507_vm3, %v264_v56, 0 }
  0x1a   : > { %887 = vmatmul.mubr.msk.bf16.vlgmr.msra.gmra.mrb[0].mxu0 %vm265_vm1, %v253_v15  ;;  %893 = vmatmul.mubr.msk.bf16.vlgmr.msra.gmra.mrb[0].mxu1 %vm265_vm1, %v254_v16 }
  0x1b   : > { %897 = vmatpush3.bf16.xpose.msra.mxu0 %v362_v17  ;;  %903 = vmatpush3.bf16.xpose.msra.mxu1 %v408_v18 }
  0x1c   : > { %898 = vmatprep.mubr.msk.bf16.mxu0 %vm1002_vm0, %v1001_v0  ;;  %904 = vmatprep.mubr.msk.bf16.mxu1 %vm1002_vm0, %v1001_v0 }
  0x1d   : > { %908 = vmatprep.subr.bf16.mxu0 %v1001_v0  ;;  %914 = vmatprep.subr.bf16.mxu1 %v1001_v0 }
  0x22   : > { %899 = vmatmul.mubr.msk.bf16.vlgmr.msra.gmra.mrb[4].mxu0 %vm265_vm1, %v255_v21  ;;  %905 = vmatmul.mubr.msk.bf16.vlgmr.msra.gmra.mrb[4].mxu1 %vm265_vm1, %v256_v22 }
  0x23   : > { %910 = vmatprep.mubr.msk.bf16.mxu0 %vm1002_vm0, %v1001_v0  ;;  %916 = vmatprep.mubr.msk.bf16.mxu1 %vm1002_vm0, %v1001_v0 }
  0x24   : > { %909 = vmatpush3.bf16.msra.mxu0 %v509_v51  ;;  %915 = vmatpush3.bf16.msra.mxu1 %v555_v53 }
  0x25   : > { %920 = vmatprep.subr.bf16.mxu0 %v1001_v0  ;;  %926 = vmatprep.subr.bf16.mxu1 %v1001_v0 }
  0xed   : > { %v306_v26 = vpop.f32.mrb[0].mxu0  ;;  %v352_v27 = vpop.f32.mrb[0].mxu1 }
  0xee   : > { %v460_v28 = vsel %vm457_vm2, %v306_v26, -1e+30  ;;  %v888_v29 = vpop.f32.mrb[1].mxu0  ;;  %v461_v30 = vsel %vm457_vm2, %v352_v27, -1e+30  ;;  %v894_v31 = vpop.f32.mrb[1].mxu1 }
  0xef   : > { %v309_v32 = vpop.f32.mrb[2].mxu0  ;;  %v464_v33 = vsel %vm265_vm1, %v460_v28, -inf  ;;  %v355_v34 = vpop.f32.mrb[2].mxu1  ;;  %v467_v37 = vsel %vm265_vm1, %v461_v30, -inf }
  0xf0   : > { %465 = vmax.xlane.f32.xlu0 %v464_v33  ;;  %v889_v35 = vpop.f32.mrb[3].mxu0  ;;  %v895_v36 = vpop.f32.mrb[3].mxu1 }
  0xf4   : > { %468 = vmax.xlane.f32.xlu0 %v467_v37 }
  0xf5   : > { %v398_v38 = vpop.f32.mrb[4].mxu0  ;;  %v444_v39 = vpop.f32.mrb[4].mxu1 }
  0xf6   : > { %v462_v40 = vsel %vm457_vm2, %v398_v38, -1e+30  ;;  %v900_v41 = vpop.f32.mrb[5].mxu0  ;;  %v463_v42 = vsel %vm457_vm2, %v444_v39, -1e+30  ;;  %v906_v43 = vpop.f32.mrb[5].mxu1 }
  0xf7   : > { %v401_v44 = vpop.f32.mrb[6].mxu0  ;;  %v470_v45 = vsel %vm265_vm1, %v462_v40, -inf  ;;  %v447_v46 = vpop.f32.mrb[6].mxu1  ;;  %v473_v49 = vsel %vm265_vm1, %v463_v42, -inf }
  0xf8   : > { %471 = vmax.xlane.f32.xlu1 %v470_v45  ;;  %v901_v47 = vpop.f32.mrb[7].mxu0  ;;  %v907_v48 = vpop.f32.mrb[7].mxu1 }
  0xfc   : > { %474 = vmax.xlane.f32.xlu1 %v473_v49 }
 0x17d   : > { %v466_v58 = vpop.xlane.xlu0 %465 }
 0x17e   : > { %v476_v59 = vsub.f32 %v460_v28, %v466_v58 }
 0x180   : > { %v480_v60 = vmul.f32 1.442695, %v476_v59 }
 0x181   : > { %v469_v61 = vpop.xlane.xlu0 %468 }
 0x182   : > { %961 = vpow2.f32 %v480_v60  ;;  %v477_v62 = vsub.f32 %v461_v30, %v469_v61 }
 0x184   : > { %v482_v63 = vmul.f32 1.442695, %v477_v62 }
 0x185   : > { %v472_v1 = vpop.xlane.xlu1 %471 }
 0x186   : > { %963 = vpow2.f32 %v482_v63  ;;  %v478_v2 = vsub.f32 %v462_v40, %v472_v1 }
 0x188   : > { %v484_v3 = vmul.f32 1.442695, %v478_v2 }
 0x189   : > { %v475_v4 = vpop.xlane.xlu1 %474 }
 0x18a   : > { %965 = vpow2.f32 %v484_v3  ;;  %v479_v5 = vsub.f32 %v463_v42, %v475_v4 }
 0x18c   : > { %v962_v6 = vpop.eup %961  ;;  %v486_v7 = vmul.f32 1.442695, %v479_v5 }
 0x18d   : > { %v500_v8 = vpack.c.bf16 %v962_v6, %v962_v6  ;;  %v488_v16 = vsel %vm265_vm1, %v962_v6, 0.0 }
 0x18e   : > { %967 = vpow2.f32 %v486_v7 }
 0x18f   : > { %911 = vmatmul.mubr.msk.bf16.vlgmr.msra.gmra.mrb[8].mxu0 %vm265_vm1, %v500_v8 }
 0x190   : > { %v964_v9 = vpop.eup %963  ;;  %921 = vmatpush3.bf16.msra.mxu0 %v601_v55  ;;  %922 = vmatprep.mubr.msk.bf16.mxu0 %vm1002_vm0, %v1001_v0 }
 0x191   : > { %v491_v10 = vsel %vm265_vm1, %v964_v9, 0.0  ;;  %v501_v11 = vpack.c.bf16 %v964_v9, %v964_v9 }
 0x192   : > { %492 = vadd.xlane.f32.xlu0 %v491_v10 }
 0x193   : > { %917 = vmatmul.mubr.msk.bf16.vlgmr.msra.gmra.mrb[8].mxu1 %vm265_vm1, %v501_v11 }
 0x194   : > { %v966_v12 = vpop.eup %965  ;;  %927 = vmatpush3.bf16.msra.mxu1 %v647_v57  ;;  %928 = vmatprep.mubr.msk.bf16.mxu1 %vm1002_vm0, %v1001_v0 }
 0x195   : > { %v494_v13 = vsel %vm265_vm1, %v966_v12, 0.0  ;;  %v502_v14 = vpack.c.bf16 %v966_v12, %v966_v12 }
 0x196   : > { %495 = vadd.xlane.f32.xlu1 %v494_v13 }
 0x197   : > { %923 = vmatmul.mubr.msk.bf16.vlgmr.msra.gmra.mrb[12].mxu0 %vm265_vm1, %v502_v14 }
 0x198   : > { %v968_v15 = vpop.eup %967 }
 0x199   : > { %v497_v17 = vsel %vm265_vm1, %v968_v15, 0.0  ;;  %v503_v18 = vpack.c.bf16 %v968_v15, %v968_v15 }
 0x19a   : > { %489 = vadd.xlane.f32.xlu1 %v488_v16  ;;  %498 = vadd.xlane.f32.xlu0 %v497_v17 }
 0x19b   : > { %929 = vmatmul.mubr.msk.bf16.vlgmr.msra.gmra.mrb[12].mxu1 %vm265_vm1, %v503_v18 }
 0x21f   : > { %v493_v0 = vpop.xlane.xlu0 %492 }
 0x223   : > { %v496_v19 = vpop.xlane.xlu1 %495 }
 0x227   : > { %v490_v20 = vpop.xlane.xlu1 %489  ;;  %v499_v21 = vpop.xlane.xlu0 %498 }
 0x228   : > { %969 = vrcp.f32 %v490_v20 }
 0x229   : > { %971 = vrcp.f32 %v493_v0 }
 0x22a   : > { %973 = vrcp.f32 %v496_v19 }
 0x22b   : > { %975 = vrcp.f32 %v499_v21 }
 0x232   : > { %v970_v22 = vpop.eup %969 }
 0x233   : > { %v972_v29 = vpop.eup %971 }
 0x234   : > { %v974_v36 = vpop.eup %973 }
 0x235   : > { %v976_v43 = vpop.eup %975 }
 0x262   : > { %v545_v23 = vpop.f32.mrb[8].mxu0 }
 0x263   : > { %v693_v24 = vmul.f32 %v970_v22, %v545_v23  ;;  %v912_v25 = vpop.f32.mrb[9].mxu0 }
 0x264   : > { %v548_v26 = vpop.f32.mrb[10].mxu0 }
 0x265   : > { %v697_v27 = vpack.c.bf16 %v693_v24, %v693_v24  ;;  %v913_v28 = vpop.f32.mrb[11].mxu0 }
 0x266   : > { %v591_v30 = vpop.f32.mrb[8].mxu1 }
 0x267   : > { %699 = vst.msk [vmem:[%s1113_s29] sm:$0xf] %vm698_vm4, %v697_v27  ;;  %v694_v31 = vmul.f32 %v972_v29, %v591_v30  ;;  %v918_v32 = vpop.f32.mrb[9].mxu1 }
 0x268   : > { %v594_v33 = vpop.f32.mrb[10].mxu1 }
 0x269   : > { %v856_v34 = vpack.c.bf16 %v694_v31, %v694_v31  ;;  %v919_v35 = vpop.f32.mrb[11].mxu1 }
 0x26a   : > { %v637_v37 = vpop.f32.mrb[12].mxu0 }
 0x26b   : > { %v695_v38 = vmul.f32 %v974_v36, %v637_v37  ;;  %704 = vrot.lane.b32.xlu0 %v856_v34, %s1003_s30  ;;  %v924_v39 = vpop.f32.mrb[13].mxu0 }
 0x26c   : > { %v640_v40 = vpop.f32.mrb[14].mxu0 }
 0x26d   : > { %v857_v41 = vpack.c.bf16 %v695_v38, %v695_v38  ;;  %v925_v42 = vpop.f32.mrb[15].mxu0 }
 0x26e   : > { %v683_v44 = vpop.f32.mrb[12].mxu1 }
 0x26f   : > { %v696_v45 = vmul.f32 %v976_v43, %v683_v44  ;;  %v930_v46 = vpop.f32.mrb[13].mxu1  ;;  %713 = vrot.lane.b32.xlu1 %v857_v41, %s1004_s4 }
 0x270   : > { %v686_v47 = vpop.f32.mrb[14].mxu1 }
 0x271   : > { %v858_v48 = vpack.c.bf16 %v696_v45, %v696_v45  ;;  %v931_v49 = vpop.f32.mrb[15].mxu1 }
 0x273   : > { %722 = vrot.lane.b32.xlu1 %v858_v48, %s1005_s5 }
 0x2dd   : > { %v705_v50 = vpop.permute.xlu0 %704 }
 0x2de   : > { %708 = vst.msk [vmem:[%s1113_s29] sm:$0xf] %vm707_vm5, %v705_v50 }
 0x2e1   : > { %v714_v51 = vpop.permute.xlu1 %713 }
 0x2e2   : > { %717 = vst.msk [vmem:[%s1113_s29] sm:$0xf] %vm716_vm6, %v714_v51 }
 0x2e5   : > { %v723_v52 = vpop.permute.xlu1 %722 }
 0x2e6   : > { %726 = vst.msk [vmem:[%s1113_s29] sm:$0xf] %vm725_vm7, %v723_v52 }
 0x2e7 PF: > { %s13_s14 = sadd.s32 1, %s999_s14   ;;  %s1132_s12 = smov %s995_s13 }
 0x2e8   : > { %p10_p5 = scmp.ge.s32.totalorder %s13_s14, 4   ;;  %s1133_s13 = smov %s1135_s15 }
 0x2ea   :  { %12 = sbr.rel (!%p10_p5) target bundleno = 2 (0x2), region = 68 }

// kernel: encoder_decoder_gpt_forward.29
= control target key start
LH: loop header
LB: loop body
LE: loop exit
PB: predicated region body
PF: predicated region fallthrough
CT: control target
= control target key end

     0   :  { %v217_v0 = vmov 0.0   ;;  %vm218_vm0 = vmmov 0   ;;  %vm152_vm1 = vcmask 257024   ;;  %s283_s1 = inlined_call_operand.vmem [shape: bf16[128,32], index: 1, kind: input, shape index: {}]   ;;  %s284_s0 = inlined_call_operand.vmem [shape: bf16[16,128], index: 0, kind: input, shape index: {}]   ;;  %s285_s3 = inlined_call_operand.vmem [shape: bf16[16,32], index: 3, kind: input, shape index: {}]   ;;  %s286_s2 = inlined_call_operand.vmem [shape: f32[1,32], index: 2, kind: input, shape index: {}]   ;;  %s287_s4 = inlined_call_operand.vmem [shape: bf16[16,32], index: 4, kind: output, shape index: {}]  }
   0x1   :  { %186 = vmatprep.subr.bf16.mxu0 %v217_v0  ;;  %v208_v1 = vld [vmem:[%s283_s1] sm:$0xff]   ;;  %202 = vmatprep.mubr.msk.bf16.mxu0 %vm218_vm0, %v217_v0  ;;  %v209_v2 = vld [vmem:[%s283_s1 + $0x8] sm:$0xff]   ;;  %v210_v3 = vld [vmem:[%s283_s1 + $0x10] sm:$0xff]  }
   0x2   :  { %187 = vmatpush3.bf16.msra.mxu0 %v208_v1  ;;  %v211_v4 = vld [vmem:[%s283_s1 + $0x18] sm:$0xff]   ;;  %v212_v5 = vld [vmem:[%s283_s1 + $0x20] sm:$0xff]   ;;  %v213_v6 = vld [vmem:[%s283_s1 + $0x28] sm:$0xff]  }
   0x3   :  { %188 = vmatprep.subr.bf16.mxu0 %v217_v0  ;;  %v214_v7 = vld [vmem:[%s283_s1 + $0x30] sm:$0xff]   ;;  %v215_v8 = vld [vmem:[%s283_s1 + $0x38] sm:$0xff]   ;;  %v216_v9 = vld [vmem:[%s284_s0] sm:$0xff]  }
   0x4   :  { %v174_v10 = vld [vmem:[%s285_s3] sm:$0xff]  }
   0x5   :  { %v159_v11 = vld [vmem:[%s286_s2] ss:$0 sm:$0xff]  ;;  %v175_v12 = vunpack.c.l.bf16 %v174_v10  ;;  %v176_v16 = vunpack.c.h.bf16 %v174_v10 }
   0x6   :  { %189 = vmatpush3.bf16.msra.mxu0 %v209_v2 }
   0x7   :  { %190 = vmatprep.subr.bf16.mxu0 %v217_v0 }
   0xa   :  { %191 = vmatpush3.bf16.msra.mxu0 %v210_v3 }
   0xb   :  { %192 = vmatprep.subr.bf16.mxu0 %v217_v0 }
   0xe   :  { %193 = vmatpush3.bf16.msra.mxu0 %v211_v4 }
   0xf   :  { %194 = vmatprep.subr.bf16.mxu0 %v217_v0 }
  0x12   :  { %195 = vmatpush3.bf16.msra.mxu0 %v212_v5 }
  0x13   :  { %196 = vmatprep.subr.bf16.mxu0 %v217_v0 }
  0x16   :  { %197 = vmatpush3.bf16.msra.mxu0 %v213_v6 }
  0x17   :  { %198 = vmatprep.subr.bf16.mxu0 %v217_v0 }
  0x1a   :  { %199 = vmatpush3.bf16.msra.mxu0 %v214_v7 }
  0x1b   :  { %200 = vmatprep.subr.bf16.mxu0 %v217_v0 }
  0x1e   :  { %201 = vmatpush3.bf16.msra.mxu0 %v215_v8 }
  0x21   :  { %203 = vmatmul.mubr.bf16.vlgmr.msra.gmra.mrb[0].mxu0 %v216_v9 }
  0xf4   :  { %v131_v13 = vpop.f32.mrb[0].mxu0 }
  0xf5   :  { %v132_v14 = vadd.f32 %v159_v11, %v131_v13  ;;  %v204_v15 = vpop.f32.mrb[1].mxu0 }
  0xf6   :  { %v134_v17 = vpop.f32.mrb[2].mxu0 }
  0xf7   :  { %v142_v18 = vadd.f32 %v175_v12, %v132_v14  ;;  %v135_v19 = vadd.f32 %v159_v11, %v134_v17  ;;  %v205_v20 = vpop.f32.mrb[3].mxu0 }
  0xf9   :  { %v171_v21 = vpack.c.bf16 %v142_v18, %v142_v18  ;;  %v143_v22 = vadd.f32 %v176_v16, %v135_v19 }
  0xfb   :  { %153 = vst.msk [vmem:[%s287_s4] sm:$0xf] %vm152_vm1, %v171_v21  ;;  %v172_v23 = vpack.c.bf16 %v143_v22, %v143_v22 }
  0xfd   :  { %154 = vst.msk [vmem:[%s287_s4 + $0x4] sm:$0xf] %vm152_vm1, %v172_v23 }

// kernel: encoder_decoder_gpt_forward.28
= control target key start
LH: loop header
LB: loop body
LE: loop exit
PB: predicated region body
PF: predicated region fallthrough
CT: control target
= control target key end

     0   :  { %vm29_vm0 = vcmask 261120   ;;  %v220_v16 = vmov 0.0   ;;  %vm221_vm1 = vmmov 0   ;;  %s279_s0 = inlined_call_operand.vmem [shape: bf16[16,32], index: 0, kind: input, shape index: {}]   ;;  %s280_s1 = inlined_call_operand.vmem [shape: bf16[32,128], index: 1, kind: input, shape index: {}]   ;;  %s281_s3 = inlined_call_operand.vmem [shape: f32[1,32], index: 3, kind: input, shape index: {}]   ;;  %s282_s4 = inlined_call_operand.vmem [shape: f32[1,32], index: 4, kind: input, shape index: {}]   ;;  %s283_s2 = inlined_call_operand.vmem [shape: f32[1,128], index: 2, kind: input, shape index: {}]   ;;  %s284_s5 = inlined_call_operand.vmem [shape: bf16[16,128], index: 5, kind: output, shape index: {}]  }
   0x1   :  { %v189_v0 = vld [vmem:[%s279_s0] sm:$0xff]   ;;  %200 = vmatprep.subr.bf16.mxu0 %v220_v16  ;;  %v211_v17 = vld [vmem:[%s280_s1 + $0x8] sm:$0xff]   ;;  %204 = vmatprep.mubr.msk.bf16.mxu0 %vm221_vm1, %v220_v16 }
   0x2   :  { %v190_v1 = vunpack.c.l.bf16 %v189_v0  ;;  %v191_v2 = vunpack.c.h.bf16 %v189_v0  ;;  %v210_v15 = vld [vmem:[%s280_s1] sm:$0xff]  }
   0x3   :  { %201 = vmatpush3.bf16.msra.mxu0 %v210_v15  ;;  %v178_v26 = vld [vmem:[%s281_s3] ss:$0 sm:$0xff] }
   0x4   :  { %v30_v3 = vsel %vm29_vm0, %v190_v1, 0.0  ;;  %v33_v4 = vsel %vm29_vm0, %v191_v2, 0.0  ;;  %202 = vmatprep.subr.bf16.mxu0 %v220_v16  ;;  %v179_v30 = vld [vmem:[%s282_s4] ss:$0 sm:$0xff] }
   0x5   :  { %31 = vadd.xlane.f32.xlu0 %v30_v3  ;;  %v180_v36 = vld [vmem:[%s283_s2] ss:$0 sm:$0xff] }
   0x7   :  { %203 = vmatpush3.bf16.msra.mxu0 %v211_v17 }
   0x9   :  { %34 = vadd.xlane.f32.xlu0 %v33_v4 }
  0x92   :  { %v32_v5 = vpop.xlane.xlu0 %31 }
  0x93   :  { %v37_v6 = vmul.f32 0.03125, %v32_v5 }
  0x95   :  { %v39_v7 = vsub.f32 %v190_v1, %v37_v6 }
  0x96   :  { %v35_v8 = vpop.xlane.xlu0 %34 }
  0x97   :  { %v38_v9 = vmul.f32 0.03125, %v35_v8  ;;  %v41_v10 = vmul.f32 %v39_v7, %v39_v7 }
  0x99   :  { %v40_v11 = vsub.f32 %v191_v2, %v38_v9  ;;  %v43_v12 = vsel %vm29_vm0, %v41_v10, 0.0 }
  0x9a   :  { %44 = vadd.xlane.f32.xlu1 %v43_v12 }
  0x9b   :  { %v42_v13 = vmul.f32 %v40_v11, %v40_v11 }
  0x9d   :  { %v46_v14 = vsel %vm29_vm0, %v42_v13, 0.0 }
  0x9e   :  { %47 = vadd.xlane.f32.xlu1 %v46_v14 }
 0x127   :  { %v45_v18 = vpop.xlane.xlu1 %44 }
 0x128   :  { %v49_v19 = vmul.f32 0.03125, %v45_v18 }
 0x12a   :  { %v51_v20 = vadd.f32 1e-05, %v49_v19 }
 0x12b   :  { %v48_v21 = vpop.xlane.xlu1 %47 }
 0x12c   :  { %212 = vrsqrt.f32 %v51_v20  ;;  %v50_v22 = vmul.f32 0.03125, %v48_v21 }
 0x12e   :  { %v52_v23 = vadd.f32 1e-05, %v50_v22 }
 0x130   :  { %214 = vrsqrt.f32 %v52_v23 }
 0x136   :  { %v213_v24 = vpop.eup %212 }
 0x137   :  { %v55_v25 = vmul.f32 %v213_v24, %v39_v7 }
 0x139   :  { %v64_v28 = vmul.f32 %v178_v26, %v55_v25 }
 0x13a   :  { %v215_v27 = vpop.eup %214 }
 0x13b   :  { %v56_v29 = vmul.f32 %v215_v27, %v40_v11  ;;  %v73_v32 = vadd.f32 %v179_v30, %v64_v28 }
 0x13d   :  { %v65_v31 = vmul.f32 %v178_v26, %v56_v29 }
 0x13f   :  { %v74_v33 = vadd.f32 %v179_v30, %v65_v31 }
 0x141   :  { %v75_v34 = vpack.c.bf16 %v74_v33, %v73_v32 }
 0x143   :  { %76 = vst.msk [vmem:[#allocation2] sm:$0xff] %vm29_vm0, %v75_v34 }
 0x14a   :  { %v77_v35 = vld [vmem:[#allocation2] sm:$0xff] }
 0x14b   :  { %205 = vmatmul.mubr.msk.bf16.vlgmr.msra.gmra.mrb[0].mxu0 %vm29_vm0, %v77_v35 }
 0x21e   :  { %v139_v37 = vpop.f32.mrb[0].mxu0 }
 0x21f   :  { %v140_v38 = vadd.f32 %v180_v36, %v139_v37  ;;  %v206_v39 = vpop.f32.mrb[1].mxu0 }
 0x220   :  { %v142_v40 = vpop.f32.mrb[2].mxu0 }
 0x221   :  { %v146_v41 = vmul.f32 %v140_v38, %v140_v38  ;;  %v143_v42 = vadd.f32 %v180_v36, %v142_v40  ;;  %v207_v43 = vpop.f32.mrb[3].mxu0 }
 0x223   :  { %v148_v44 = vmul.f32 %v146_v41, %v140_v38  ;;  %v147_v45 = vmul.f32 %v143_v42, %v143_v42 }
 0x225   :  { %v150_v46 = vmul.f32 0.044715, %v148_v44  ;;  %v149_v47 = vmul.f32 %v147_v45, %v143_v42 }
 0x227   :  { %v152_v48 = vadd.f32 %v150_v46, %v140_v38  ;;  %v151_v49 = vmul.f32 0.044715, %v149_v47 }
 0x229   :  { %v154_v50 = vmul.f32 0.7978846, %v152_v48  ;;  %v153_v51 = vadd.f32 %v151_v49, %v143_v42 }
 0x22b   :  { %216 = vtanh.f32 %v154_v50  ;;  %v155_v52 = vmul.f32 0.7978846, %v153_v51 }
 0x22d   :  { %218 = vtanh.f32 %v155_v52 }
 0x235   :  { %v217_v53 = vpop.eup %216 }
 0x236   :  { %v158_v54 = vadd.f32 1.0, %v217_v53 }
 0x237   :  { %v219_v55 = vpop.eup %218 }
 0x238   :  { %v160_v56 = vmul.f32 0.5, %v158_v54  ;;  %v159_v57 = vadd.f32 1.0, %v219_v55 }
 0x23a   :  { %v161_v58 = vmul.f32 0.5, %v159_v57  ;;  %v162_v59 = vmul.f32 %v160_v56, %v140_v38 }
 0x23c   :  { %v163_v60 = vmul.f32 %v161_v58, %v143_v42 }
 0x23e   :  { %v195_v61 = vpack.c.bf16 %v163_v60, %v162_v59 }
 0x240   :  { %196 = vst [vmem:[%s284_s5] sm:$0xff] %v195_v61  }

// kernel: encoder_decoder_gpt_forward.35
= control target key start
LH: loop header
LB: loop body
LE: loop exit
PB: predicated region body
PF: predicated region fallthrough
CT: control target
= control target key end

     0   :  { %vm26_vm0 = vcmask 261120   ;;  %v171_v16 = vmov 0.0   ;;  %vm172_vm1 = vmmov 0   ;;  %vm136_vm2 = vcmask 130048   ;;  %s225_s0 = inlined_call_operand.vmem [shape: bf16[16,32], index: 0, kind: input, shape index: {}]   ;;  %s226_s1 = inlined_call_operand.vmem [shape: bf16[32,16], index: 1, kind: input, shape index: {}]   ;;  %s227_s2 = inlined_call_operand.vmem [shape: f32[1,32], index: 2, kind: input, shape index: {}]   ;;  %s228_s3 = inlined_call_operand.vmem [shape: f32[1,32], index: 3, kind: input, shape index: {}]   ;;  %s229_s4 = inlined_call_operand.vmem [shape: f32[16,16], index: 4, kind: output, shape index: {}]  }
   0x1   :  { %v149_v0 = vld [vmem:[%s225_s0] sm:$0xff]   ;;  %155 = vmatprep.subr.bf16.mxu0 %v171_v16  ;;  %v166_v17 = vld [vmem:[%s226_s1 + $0x8] sm:$0xff]   ;;  %159 = vmatprep.mubr.msk.bf16.mxu0 %vm172_vm1, %v171_v16 }
   0x2   :  { %v150_v1 = vunpack.c.l.bf16 %v149_v0  ;;  %v151_v2 = vunpack.c.h.bf16 %v149_v0  ;;  %v165_v15 = vld [vmem:[%s226_s1] sm:$0xff]  }
   0x3   :  { %156 = vmatpush3.bf16.msra.mxu0 %v165_v15  ;;  %v143_v26 = vld [vmem:[%s227_s2] ss:$0 sm:$0xff] }
   0x4   :  { %v27_v3 = vsel %vm26_vm0, %v150_v1, 0.0  ;;  %v30_v4 = vsel %vm26_vm0, %v151_v2, 0.0  ;;  %157 = vmatprep.subr.bf16.mxu0 %v171_v16  ;;  %v144_v30 = vld [vmem:[%s228_s3] ss:$0 sm:$0xff] }
   0x5   :  { %28 = vadd.xlane.f32.xlu0 %v27_v3 }
   0x7   :  { %158 = vmatpush3.bf16.msra.mxu0 %v166_v17 }
   0x9   :  { %31 = vadd.xlane.f32.xlu0 %v30_v4 }
  0x92   :  { %v29_v5 = vpop.xlane.xlu0 %28 }
  0x93   :  { %v34_v6 = vmul.f32 0.03125, %v29_v5 }
  0x95   :  { %v36_v7 = vsub.f32 %v150_v1, %v34_v6 }
  0x96   :  { %v32_v8 = vpop.xlane.xlu0 %31 }
  0x97   :  { %v35_v9 = vmul.f32 0.03125, %v32_v8  ;;  %v38_v10 = vmul.f32 %v36_v7, %v36_v7 }
  0x99   :  { %v37_v11 = vsub.f32 %v151_v2, %v35_v9  ;;  %v40_v12 = vsel %vm26_vm0, %v38_v10, 0.0 }
  0x9a   :  { %41 = vadd.xlane.f32.xlu1 %v40_v12 }
  0x9b   :  { %v39_v13 = vmul.f32 %v37_v11, %v37_v11 }
  0x9d   :  { %v43_v14 = vsel %vm26_vm0, %v39_v13, 0.0 }
  0x9e   :  { %44 = vadd.xlane.f32.xlu1 %v43_v14 }
 0x127   :  { %v42_v18 = vpop.xlane.xlu1 %41 }
 0x128   :  { %v46_v19 = vmul.f32 0.03125, %v42_v18 }
 0x12a   :  { %v48_v20 = vadd.f32 1e-05, %v46_v19 }
 0x12b   :  { %v45_v21 = vpop.xlane.xlu1 %44 }
 0x12c   :  { %167 = vrsqrt.f32 %v48_v20  ;;  %v47_v22 = vmul.f32 0.03125, %v45_v21 }
 0x12e   :  { %v49_v23 = vadd.f32 1e-05, %v47_v22 }
 0x130   :  { %169 = vrsqrt.f32 %v49_v23 }
 0x136   :  { %v168_v24 = vpop.eup %167 }
 0x137   :  { %v52_v25 = vmul.f32 %v168_v24, %v36_v7 }
 0x139   :  { %v61_v28 = vmul.f32 %v143_v26, %v52_v25 }
 0x13a   :  { %v170_v27 = vpop.eup %169 }
 0x13b   :  { %v53_v29 = vmul.f32 %v170_v27, %v37_v11  ;;  %v70_v32 = vadd.f32 %v144_v30, %v61_v28 }
 0x13d   :  { %v62_v31 = vmul.f32 %v143_v26, %v53_v29 }
 0x13f   :  { %v71_v33 = vadd.f32 %v144_v30, %v62_v31 }
 0x141   :  { %v72_v34 = vpack.c.bf16 %v71_v33, %v70_v32 }
 0x143   :  { %73 = vst.msk [vmem:[#allocation2] sm:$0xff] %vm26_vm0, %v72_v34 }
 0x14a   :  { %v74_v35 = vld [vmem:[#allocation2] sm:$0xff] }
 0x14b   :  { %160 = vmatmul.mubr.msk.bf16.vlgmr.msra.gmra.mrb[0].mxu0 %vm26_vm0, %v74_v35 }
 0x21e   :  { %v129_v36 = vpop.f32.mrb[0].mxu0 }
 0x21f   :  { %137 = vst.msk [vmem:[%s229_s4] sm:$0xff] %vm136_vm2, %v129_v36  ;;  %v161_v37 = vpop.f32.mrb[1].mxu0 }
 0x220   :  { %v132_v38 = vpop.f32.mrb[2].mxu0 }
 0x221   :  { %138 = vst.msk [vmem:[%s229_s4 + $0x8] sm:$0xff] %vm136_vm2, %v132_v38  ;;  %v162_v39 = vpop.f32.mrb[3].mxu0 }

// kernel: encoder_decoder_gpt_forward.47
= control target key start
LH: loop header
LB: loop body
LE: loop exit
PB: predicated region body
PF: predicated region fallthrough
CT: control target
= control target key end

     0   :  { %vm27_vm0 = vcmask 261120   ;;  %s274_s0 = inlined_call_operand.vmem [shape: bf16[16,32], index: 0, kind: input, shape index: {}]   ;;  %s275_s1 = inlined_call_operand.vmem [shape: bf16[32,16], index: 1, kind: input, shape index: {}]   ;;  %s276_s2 = inlined_call_operand.vmem [shape: f32[1,32], index: 2, kind: input, shape index: {}]   ;;  %s277_s3 = inlined_call_operand.vmem [shape: f32[1,32], index: 3, kind: input, shape index: {}]   ;;  %s278_s4 = inlined_call_operand.hbm [shape: f32[16,16], index: 4, kind: output, shape index: {}]  }
   0x1   :  { %v162_v0 = vld [vmem:[%s274_s0] sm:$0xff]  }
   0x2   :  { %v163_v1 = vunpack.c.l.bf16 %v162_v0  ;;  %v164_v2 = vunpack.c.h.bf16 %v162_v0 }
   0x3   :  { %9 = vsyncpa [#allocation4], 0  ;;  %v181_v15 = vld [vmem:[%s275_s1] sm:$0xff]   ;;  %v211_v16 = vmov 0.0   ;;  %v182_v17 = vld [vmem:[%s275_s1 + $0x8] sm:$0xff]   ;;  %vm212_vm1 = vmmov 0  }
   0x4   :  { %v28_v3 = vsel %vm27_vm0, %v163_v1, 0.0  ;;  %v31_v4 = vsel %vm27_vm0, %v164_v2, 0.0  ;;  %168 = vmatprep.subr.bf16.mxu0 %v211_v16  ;;  %172 = vmatprep.mubr.msk.bf16.mxu0 %vm212_vm1, %v211_v16  ;;  %v156_v26 = vld [vmem:[%s276_s2] ss:$0 sm:$0xff]  ;;  %s213_s23 = smov [#allocation3]   ;;  %vm137_vm2 = vcmask 130048  }
   0x5   :  { %29 = vadd.xlane.f32.xlu0 %v28_v3  ;;  %169 = vmatpush3.bf16.msra.mxu0 %v181_v15  ;;  %v157_v30 = vld [vmem:[%s277_s3] ss:$0 sm:$0xff]  ;;  %s145_s24 = sshll.u32 %s213_s23, 4  ;;  %s146_s24 = int_to_ptr.vmem [resolvable:$true] %s145_s24 }
   0x6   :  { %170 = vmatprep.subr.bf16.mxu0 %v211_v16  ;;  %s187_s2 = scalar_lea.vmem %s146_s24, 256  ;;  %p192_p1 = scmp.lt.s32.totalorder %s146_s24, %s146_s24 }
   0x7   :  { %p188_p0 = scmp.ne.s32.totalorder %s146_s24, %s187_s2  ;;  %p193_p2 = scmp.lt.s32.totalorder %s187_s2, %s187_s2 }
   0x9   :  { %32 = vadd.xlane.f32.xlu0 %v31_v4  ;;  %171 = vmatpush3.bf16.msra.mxu0 %v182_v17  ;;  %p194_p3 = por %p193_p2, %p192_p1 }
   0xb   :  { %p195_p4 = pnand %p194_p3, %p188_p0 }
  0x92   :  { %v30_v5 = vpop.xlane.xlu0 %29 }
  0x93   :  { %v35_v6 = vmul.f32 0.03125, %v30_v5 }
  0x95   :  { %v37_v7 = vsub.f32 %v163_v1, %v35_v6 }
  0x96   :  { %v33_v8 = vpop.xlane.xlu0 %32 }
  0x97   :  { %v36_v9 = vmul.f32 0.03125, %v33_v8  ;;  %v39_v10 = vmul.f32 %v37_v7, %v37_v7 }
  0x99   :  { %v38_v11 = vsub.f32 %v164_v2, %v36_v9  ;;  %v41_v12 = vsel %vm27_vm0, %v39_v10, 0.0 }
  0x9a   :  { %42 = vadd.xlane.f32.xlu1 %v41_v12 }
  0x9b   :  { %v40_v13 = vmul.f32 %v38_v11, %v38_v11 }
  0x9d   :  { %v44_v14 = vsel %vm27_vm0, %v40_v13, 0.0 }
  0x9e   :  { %45 = vadd.xlane.f32.xlu1 %v44_v14 }
 0x127   :  { %v43_v18 = vpop.xlane.xlu1 %42 }
 0x128   :  { %v47_v19 = vmul.f32 0.03125, %v43_v18 }
 0x12a   :  { %v49_v20 = vadd.f32 1e-05, %v47_v19 }
 0x12b   :  { %v46_v21 = vpop.xlane.xlu1 %45 }
 0x12c   :  { %183 = vrsqrt.f32 %v49_v20  ;;  %v48_v22 = vmul.f32 0.03125, %v46_v21 }
 0x12e   :  { %v50_v23 = vadd.f32 1e-05, %v48_v22 }
 0x130   :  { %185 = vrsqrt.f32 %v50_v23 }
 0x136   :  { %v184_v24 = vpop.eup %183 }
 0x137   :  { %v53_v25 = vmul.f32 %v184_v24, %v37_v7 }
 0x139   :  { %v62_v28 = vmul.f32 %v156_v26, %v53_v25 }
 0x13a   :  { %v186_v27 = vpop.eup %185 }
 0x13b   :  { %v54_v29 = vmul.f32 %v186_v27, %v38_v11  ;;  %v71_v32 = vadd.f32 %v157_v30, %v62_v28 }
 0x13d   :  { %v63_v31 = vmul.f32 %v156_v26, %v54_v29 }
 0x13f   :  { %v72_v33 = vadd.f32 %v157_v30, %v63_v31 }
 0x141   :  { %v73_v34 = vpack.c.bf16 %v72_v33, %v71_v32 }
 0x143   :  { %74 = vst.msk [vmem:[#allocation2] sm:$0xff] %vm27_vm0, %v73_v34 }
 0x14a   :  { %v75_v35 = vld [vmem:[#allocation2] sm:$0xff] }
 0x14b   :  { %173 = vmatmul.mubr.msk.bf16.vlgmr.msra.gmra.mrb[0].mxu0 %vm27_vm0, %v75_v35 }
 0x21e   :  { %v130_v36 = vpop.f32.mrb[0].mxu0 }
 0x21f   :  { %138 = vst.msk [vmem:[#allocation3] sm:$0xff] %vm137_vm2, %v130_v36  ;;  %v174_v37 = vpop.f32.mrb[1].mxu0 }
 0x220   :  { %v133_v38 = vpop.f32.mrb[2].mxu0 }
 0x221   :  { %139 = vst.msk [vmem:[#allocation3 + $0x8] sm:$0xff] %vm137_vm2, %v133_v38  ;;  %v175_v39 = vpop.f32.mrb[3].mxu0 }
 0x222   :  { %198 = shalt.err (!%p195_p4)
}
 0x223   :  { %s199_s26 = scalar_lea.hbm %s278_s4, 256 }
 0x224   :  { %p200_p5 = scmp.ne.s32.totalorder %s278_s4, %s199_s26  ;;  %p203_p6 = scmp.lt.u32.totalorder %s199_s26, %s278_s4 }
 0x226   :  { %p205_p7 = pnand %p203_p6, %p200_p5 }
 0x228   :  { %208 = shalt.err (!%p205_p7)
}
 0x229   :  { %s214_s5 = smov 128   ;;  %s215_s6 = smov 8  }
 0x22a   :  { %151 = dma.vmem_to_hbm [thread:$0]  %s146_s24, 256, %s278_s4, [#allocation4], %s214_s5, %s214_s5, %s215_s6  }
 0x22b   :  { %209 = dma.done.wait [#allocation4], 256  }
 0x22c   :  { %210 = vsyncadd [#allocation4], 4294967040 }
 0x22d   :  { %155 = vsyncpa [#allocation4], 1 }

</bundles_post_ra>
